<compile_context>
chip_gen: v7x
topology: tpu7x:2x2x1
jax: 0.10.0
libtpu: 0.0.40
codegen_flags: <defaults>
</compile_context>

<pallas_src>
import functools

import jax
import jax.numpy as jnp
from jax.experimental import pallas as pl
from jax.experimental.pallas import tpu as pltpu

LANE = 128
_EPS = 1e-5
_ACT_DTYPE = jnp.bfloat16      # storage dtype for inter-kernel activations


def _round_up(x, m):
    return (x + m - 1) // m * m


def _vmem_limit_bytes():
    # Per-generation VMEM budget: 75% of physical, capped, with a safe fallback.
    try:
        cap = pltpu.get_tpu_info().vmem_capacity_bytes
        return int(max(32 * 1024 * 1024, min(cap * 3 // 4, 96 * 1024 * 1024)))
    except Exception:
        return 32 * 1024 * 1024


_COMPILER_PARAMS = pltpu.CompilerParams(
    dimension_semantics=("parallel",),
    vmem_limit_bytes=_vmem_limit_bytes(),
)


# ----------------------------------------------------------------------------
# Kernel 1: direct convolution (vertical taps streamed in-kernel) + bias,
#           with fused per-image BatchNorm partial statistics.
# ----------------------------------------------------------------------------
def _conv_kernel(x_ref, w_ref, b_ref, y_ref, ps_ref, pq_ref, *,
                 kh_e, wo, mrows, kwc, relu_in):
    # x_ref : (1, Hin*Wo, kw_e*Cin) bf16  width-windowed activation (one image)
    # w_ref : (kh_e*kw_e*Cin, Coutp) bf16 resident weights
    # b_ref : (1, Coutp) f32              resident bias
    # y_ref : (1, mrows, Coutp)           conv output (pre-BN), mrows = Ho*Wo
    # ps/pq : (1, 1, Coutp) f32           per-image BN partial sums of y and y^2
    coutp = w_ref.shape[1]
    xv = x_ref[0]
    if relu_in:
        # Leading ReLU of the ResBlock, applied once to the un-duplicated block
        # (ReLU commutes with the patch gather); rides in VPU slack under the MXU.
        xv = jnp.maximum(xv, 0).astype(xv.dtype)

    acc = jnp.zeros((mrows, coutp), jnp.float32)
    for a in range(kh_e):                       # static: 2 or 3 vertical taps
        t = xv[a * wo:a * wo + mrows, :]        # contiguous row window, no reshape
        acc = acc + jnp.dot(t, w_ref[a * kwc:(a + 1) * kwc, :],
                            preferred_element_type=jnp.float32)
    y = acc + b_ref[...]
    y_ref[0] = y.astype(y_ref.dtype)
    ps_ref[0] = jnp.sum(y, axis=0, keepdims=True)
    pq_ref[0] = jnp.sum(y * y, axis=0, keepdims=True)


# ----------------------------------------------------------------------------
# Kernel 2: BatchNorm apply with optional fused residual add / ReLU / 1x1 conv
#           (and the 1x1 conv's BN partial statistics).
# ----------------------------------------------------------------------------
def _bn_apply_kernel(*refs, relu, has_res, fuse_mm, emit_stats):
    it = iter(refs)
    y_ref = next(it)
    scale_ref = next(it)
    shift_ref = next(it)
    res_ref = next(it) if has_res else None
    w_ref = next(it) if fuse_mm else None
    b_ref = next(it) if fuse_mm else None
    out_ref = next(it)
    ps_ref = next(it) if emit_stats else None
    pq_ref = next(it) if emit_stats else None

    z = y_ref[0].astype(jnp.float32) * scale_ref[...] + shift_ref[...]
    if has_res:
        z = z + res_ref[0].astype(jnp.float32)      # ResBlock: out = x + block(x)
    if relu:
        z = jnp.maximum(z, 0.0)
    if fuse_mm:
        # Fused 1x1 conv (ResBlock second conv / to_latent): VMEM-resident weights.
        z = jnp.dot(z.astype(jnp.bfloat16), w_ref[...],
                    preferred_element_type=jnp.float32) + b_ref[...]
    out_ref[0] = z.astype(out_ref.dtype)
    if emit_stats:
        ps_ref[0] = jnp.sum(z, axis=0, keepdims=True)
        pq_ref[0] = jnp.sum(z * z, axis=0, keepdims=True)


# ----------------------------------------------------------------------------
# Weight / layout preparation (tiny, plain JAX)
# ----------------------------------------------------------------------------
def _weight_matrix_s1(w_oihw, cin_act, cout_p):
    cout, cin, kh, kw = w_oihw.shape
    w = jnp.transpose(w_oihw.astype(jnp.float32), (2, 3, 1, 0))     # (kh, kw, cin, cout)
    w = jnp.pad(w, ((0, 0), (0, 0), (0, cin_act - cin), (0, cout_p - cout)))
    return w.reshape(kh * kw * cin_act, cout_p).astype(jnp.bfloat16)


def _weight_matrix_s2(w_oihw, cin_act, cout_p):
    # 4x4 stride-2 conv re-expressed (after input space-to-depth) as a 2x2 stride-1
    # conv over 4*cin channels ordered (row-phase p, col-phase q, cin).
    cout, cin, kh, kw = w_oihw.shape
    assert kh == 4 and kw == 4
    w = jnp.transpose(w_oihw.astype(jnp.float32), (2, 3, 1, 0))     # (4, 4, cin, cout)
    w = jnp.pad(w, ((0, 0), (0, 0), (0, cin_act - cin), (0, cout_p - cout)))
    w = w.reshape(2, 2, 2, 2, cin_act, cout_p)                      # (a, p, b, q, ci, co)
    w = jnp.transpose(w, (0, 2, 1, 3, 4, 5))                        # (a, b, p, q, ci, co)
    return w.reshape(kh * kw * cin_act, cout_p).astype(jnp.bfloat16)


def _weight_1x1(w_oihw, bias, cin_p=LANE, cout_p=LANE):
    cout, cin = w_oihw.shape[0], w_oihw.shape[1]
    w = jnp.transpose(w_oihw[:, :, 0, 0].astype(jnp.float32))       # (cin, cout)
    w = jnp.pad(w, ((0, cin_p - cin), (0, cout_p - cout))).astype(jnp.bfloat16)
    b = jnp.pad(bias.astype(jnp.float32), (0, cout_p - cout)).reshape(1, cout_p)
    return w, b


# ----------------------------------------------------------------------------
# Conv layer wrapper
# ----------------------------------------------------------------------------
def conv_layer(x_nhwc, w_oihw, bias, *, stride, pad, relu_in=False,
               cout_p=LANE, out_dtype=_ACT_DTYPE):
    n, h, w_sp, cin = x_nhwc.shape
    cout, _, kh, kw = w_oihw.shape
    x_nhwc = x_nhwc.astype(_ACT_DTYPE)            # bf16 before any window extraction

    xp = jnp.pad(x_nhwc, ((0, 0), (pad, pad), (pad, pad), (0, 0)))
    hp, wp = h + 2 * pad, w_sp + 2 * pad

    if stride == 2:
        assert kh == 4 and kw == 4 and pad == 1 and hp % 2 == 0 and wp % 2 == 0
        # Space-to-depth: pure permutation (no duplication) turning the stride-2 conv
        # into a stride-1 2x2 conv with 4*cin channels ordered (p, q, ci).
        xe = xp.reshape(n, hp // 2, 2, wp // 2, 2, cin)
        xe = jnp.transpose(xe, (0, 1, 3, 2, 4, 5)).reshape(n, hp // 2, wp // 2, 4 * cin)
        kh_e, kw_e, cin_e = 2, 2, 4 * cin
        ho, wo = (hp - kh) // 2 + 1, (wp - kw) // 2 + 1
        wmat = _weight_matrix_s2(w_oihw, cin, cout_p)
    else:
        assert stride == 1
        xe = xp
        kh_e, kw_e, cin_e = kh, kw, cin
        ho, wo = hp - kh + 1, wp - kw + 1
        wmat = _weight_matrix_s1(w_oihw, cin, cout_p)

    # Width-only window concat (duplication kw_e = 2..3, NOT the full kh*kw = 9..16);
    # vertical taps are streamed inside the kernel via contiguous row offsets.
    hin = xe.shape[1]
    cols = [xe[:, :, b:b + wo, :] for b in range(kw_e)]
    x2 = jnp.concatenate(cols, axis=-1).reshape(n, hin * wo, kw_e * cin_e)

    kwc = kw_e * cin_e
    k_total = kh_e * kwc
    mrows = ho * wo
    bias_p = jnp.pad(bias.astype(jnp.float32), (0, cout_p - cout)).reshape(1, cout_p)

    kern = functools.partial(_conv_kernel, kh_e=kh_e, wo=wo, mrows=mrows,
                             kwc=kwc, relu_in=relu_in)
    y, ps, pq = pl.pallas_call(
        kern,
        out_shape=(jax.ShapeDtypeStruct((n, mrows, cout_p), out_dtype),
                   jax.ShapeDtypeStruct((n, 1, cout_p), jnp.float32),
                   jax.ShapeDtypeStruct((n, 1, cout_p), jnp.float32)),
        grid=(n,),
        in_specs=[pl.BlockSpec((1, hin * wo, kwc), lambda i: (i, 0, 0)),
                  pl.BlockSpec((k_total, cout_p), lambda i: (0, 0)),   # resident weights
                  pl.BlockSpec((1, cout_p), lambda i: (0, 0))],        # resident bias
        out_specs=(pl.BlockSpec((1, mrows, cout_p), lambda i: (i, 0, 0)),
                   pl.BlockSpec((1, 1, cout_p), lambda i: (i, 0, 0)),
                   pl.BlockSpec((1, 1, cout_p), lambda i: (i, 0, 0))),
        compiler_params=_COMPILER_PARAMS,
    )(x2, wmat, bias_p)
    return y, ps, pq, (ho, wo)


# ----------------------------------------------------------------------------
# BatchNorm finalize (per-channel scalar math, plain jnp) and apply wrapper
# ----------------------------------------------------------------------------
def bn_finalize(ps, pq, gamma, beta, count, cout_p=LANE):
    cout = gamma.shape[0]
    g = jnp.pad(gamma.astype(jnp.float32), (0, cout_p - cout))   # padded chans -> scale 0
    b = jnp.pad(beta.astype(jnp.float32), (0, cout_p - cout))
    s = jnp.sum(ps, axis=(0, 1))
    q = jnp.sum(pq, axis=(0, 1))
    mean = s / float(count)
    var = jnp.maximum(q / float(count) - mean * mean, 0.0)       # biased, torch-style
    scale = g * jax.lax.rsqrt(var + _EPS)
    shift = b - mean * scale
    return scale.reshape(1, cout_p), shift.reshape(1, cout_p)


def bn_apply(y, scale, shift, *, relu=False, residual=None, mm_w=None, mm_b=None,
             emit_stats=False, out_dtype=_ACT_DTYPE):
    n, mb, cp = y.shape
    fuse_mm = mm_w is not None
    has_res = residual is not None

    tile = pl.BlockSpec((1, mb, cp), lambda i: (i, 0, 0))
    vec = pl.BlockSpec((1, cp), lambda i: (0, 0))
    row = pl.BlockSpec((1, 1, cp), lambda i: (i, 0, 0))

    in_specs = [tile, vec, vec]
    args = [y, scale, shift]
    if has_res:
        in_specs.append(tile)
        args.append(residual)
    if fuse_mm:
        in_specs.append(pl.BlockSpec((cp, cp), lambda i: (0, 0)))
        in_specs.append(vec)
        args.extend([mm_w, mm_b])

    out_shape = [jax.ShapeDtypeStruct((n, mb, cp), out_dtype)]
    out_specs = [tile]
    if emit_stats:
        out_shape += [jax.ShapeDtypeStruct((n, 1, cp), jnp.float32)] * 2
        out_specs += [row, row]

    kern = functools.partial(_bn_apply_kernel, relu=relu, has_res=has_res,
                             fuse_mm=fuse_mm, emit_stats=emit_stats)
    return pl.pallas_call(
        kern,
        out_shape=tuple(out_shape) if len(out_shape) > 1 else out_shape[0],
        grid=(n,),
        in_specs=in_specs,
        out_specs=tuple(out_specs) if len(out_specs) > 1 else out_specs[0],
        compiler_params=_COMPILER_PARAMS,
    )(*args)


# ----------------------------------------------------------------------------
# Parameter init (deterministic, shapes from the torch module __init__)
# ----------------------------------------------------------------------------
def init_params(key, n_chan, zdim, hidden):
    keys = jax.random.split(key, 8)

    def conv_init(k, cout, cin, kh, kw):
        fan_in = cin * kh * kw
        scale = 1.0 / jnp.sqrt(float(fan_in))
        kw_, kb_ = jax.random.split(k)
        w = jax.random.uniform(kw_, (cout, cin, kh, kw), jnp.float32, -scale, scale)
        b = jax.random.uniform(kb_, (cout,), jnp.float32, -scale, scale)
        return w, b

    p = {}
    p["conv1_w"], p["conv1_b"] = conv_init(keys[0], hidden, n_chan, 4, 4)
    p["bn1_g"], p["bn1_b"] = jnp.ones((hidden,)), jnp.zeros((hidden,))
    p["conv2_w"], p["conv2_b"] = conv_init(keys[1], zdim, hidden, 4, 4)
    p["bn2_g"], p["bn2_b"] = jnp.ones((zdim,)), jnp.zeros((zdim,))
    for r, k1, k2 in (("rb1", keys[2], keys[3]), ("rb2", keys[4], keys[5])):
        p[f"{r}_c1_w"], p[f"{r}_c1_b"] = conv_init(k1, zdim, zdim, 3, 3)
        p[f"{r}_bn1_g"], p[f"{r}_bn1_b"] = jnp.ones((zdim,)), jnp.zeros((zdim,))
        p[f"{r}_c2_w"], p[f"{r}_c2_b"] = conv_init(k2, zdim, zdim, 1, 1)
        p[f"{r}_bn2_g"], p[f"{r}_bn2_b"] = jnp.ones((zdim,)), jnp.zeros((zdim,))
    p["lat_w"], p["lat_b"] = conv_init(keys[6], zdim, zdim, 1, 1)
    return p


# ----------------------------------------------------------------------------
# Forward pass (mirrors OordEncoder.forward; BatchNorm uses batch statistics,
# i.e. the freshly-constructed torch module in its default training mode)
# ----------------------------------------------------------------------------
def oord_encoder_forward(x_nchw, p):
    n = x_nchw.shape[0]
    zdim = p["conv2_w"].shape[0]

    x = jnp.transpose(x_nchw, (0, 2, 3, 1)).astype(_ACT_DTYPE)       # NCHW -> NHWC bf16
    cin = x.shape[-1]
    cin_p = _round_up(cin, 8)
    if cin_p > cin:
        x = jnp.pad(x, ((0, 0), (0, 0), (0, 0), (0, cin_p - cin)))

    # Conv2d(n_chan, hidden, 4, 2, 1) -> BN -> ReLU
    y1, ps1, pq1, (h1h, h1w) = conv_layer(x, p["conv1_w"], p["conv1_b"], stride=2, pad=1)
    sc1, sh1 = bn_finalize(ps1, pq1, p["bn1_g"], p["bn1_b"], n * h1h * h1w)
    h1 = bn_apply(y1, sc1, sh1, relu=True)                           # (N, H1*W1, 128) bf16

    # Conv2d(hidden, zdim, 4, 2, 1) -> BN
    h1_nhwc = h1.reshape(n, h1h, h1w, LANE)
    y2, ps2, pq2, (hh, ww) = conv_layer(h1_nhwc, p["conv2_w"], p["conv2_b"],
                                        stride=2, pad=1)
    sc2, sh2 = bn_finalize(ps2, pq2, p["bn2_g"], p["bn2_b"], n * hh * ww)
    h = bn_apply(y2, sc2, sh2)                                       # ResBlock input / residual

    lat_w, lat_b = _weight_1x1(p["lat_w"], p["lat_b"])

    # Two ResBlocks: x + BN(Conv1x1(ReLU(BN(Conv3x3(ReLU(x))))))
    mu_flat = None
    for r, last in (("rb1", False), ("rb2", True)):
        c2_w, c2_b = _weight_1x1(p[f"{r}_c2_w"], p[f"{r}_c2_b"])
        h_nhwc = h.reshape(n, hh, ww, LANE)
        # Conv3x3 with the ResBlock's leading ReLU fused into the kernel prologue.
        yb1, psb1, pqb1, _ = conv_layer(h_nhwc, p[f"{r}_c1_w"], p[f"{r}_c1_b"],
                                        stride=1, pad=1, relu_in=True)
        scb1, shb1 = bn_finalize(psb1, pqb1, p[f"{r}_bn1_g"], p[f"{r}_bn1_b"], n * hh * ww)
        # BN -> ReLU -> 1x1 conv fused (also emits the next BN's partial statistics).
        yb2, psb2, pqb2 = bn_apply(yb1, scb1, shb1, relu=True,
                                   mm_w=c2_w, mm_b=c2_b, emit_stats=True)
        scb2, shb2 = bn_finalize(psb2, pqb2, p[f"{r}_bn2_g"], p[f"{r}_bn2_b"], n * hh * ww)
        if not last:
            h = bn_apply(yb2, scb2, shb2, residual=h)                # BN + residual fused
        else:
            # Final BN + residual + to_latent(1x1) fused in one kernel; the reference
            # applies the SAME to_latent layer twice -> mu and logvar are bit-identical.
            mu_flat = bn_apply(yb2, scb2, shb2, residual=h,
                               mm_w=lat_w, mm_b=lat_b, out_dtype=jnp.float32)

    mu_nhwc = mu_flat.reshape(n, hh, ww, LANE)[..., :zdim]
    mu = jnp.transpose(mu_nhwc, (0, 3, 1, 2))
    logvar = mu
    return mu, logvar


if __name__ == "__main__":
    key = jax.random.PRNGKey(0)
    kx, kp = jax.random.split(key)

    N, C, H, W = 2, 4, 16, 16
    zdim, hidden = 8, 32

    x = jax.random.normal(kx, (N, C, H, W), dtype=jnp.float32)
    params = init_params(kp, C, zdim, hidden)

    mu, logvar = jax.jit(oord_encoder_forward)(x, params)
    jax.block_until_ready((mu, logvar))

    assert mu.shape == (N, zdim, H // 4, W // 4), mu.shape
    assert logvar.shape == (N, zdim, H // 4, W // 4), logvar.shape
    print("KERNEL_OK")
</pallas_src>

<mosaic_0001>
module attributes {stable_mosaic.version = 11 : i64} {
  func.func @_conv_kernel(%arg0: i32, %arg1: memref<1x72x64xbf16, #tpu.memory_space<vmem>>, %arg2: memref<128x128xbf16, #tpu.memory_space<vmem>>, %arg3: memref<1x128xf32, #tpu.memory_space<vmem>>, %arg4: memref<1x64x128xbf16, #tpu.memory_space<vmem>>, %arg5: memref<1x1x128xf32, #tpu.memory_space<vmem>>, %arg6: memref<1x1x128xf32, #tpu.memory_space<vmem>>) attributes {dimension_semantics = [#tpu.dimension_semantics<parallel>], iteration_bounds = array<i64: 2>, scalar_prefetch = 0 : i64, scratch_operands = 0 : i64, tpu.core_type = #tpu.core_type<tc>, window_params = [{transform_indices = @transform_0, window_bounds = array<i64: 1, 72, 64>}, {pipeline_mode = #tpu.pipeline_mode<synchronous>, transform_indices = @transform_1, window_bounds = array<i64: 128, 128>}, {pipeline_mode = #tpu.pipeline_mode<synchronous>, transform_indices = @transform_2, window_bounds = array<i64: 1, 128>}, {transform_indices = @transform_3, window_bounds = array<i64: 1, 64, 128>}, {transform_indices = @transform_4, window_bounds = array<i64: 1, 1, 128>}, {transform_indices = @transform_5, window_bounds = array<i64: 1, 1, 128>}]} {
    %c0 = arith.constant 0 : index
    %c0_0 = arith.constant 0 : index
    %c0_1 = arith.constant 0 : index
    %0 = vector.load %arg1[%c0, %c0_0, %c0_1] : memref<1x72x64xbf16, #tpu.memory_space<vmem>>, vector<1x72x64xbf16>
    %1 = vector.shape_cast %0 : vector<1x72x64xbf16> to vector<72x64xbf16>
    %cst = arith.constant 0.000000e+00 : f32
    %2 = vector.broadcast %cst : f32 to vector<64x128xf32>
    %3 = vector.extract_strided_slice %1 {offsets = [0, 0], sizes = [64, 64], strides = [1, 1]} : vector<72x64xbf16> to vector<64x64xbf16>
    %c0_2 = arith.constant 0 : index
    %c0_3 = arith.constant 0 : index
    %4 = vector.load %arg2[%c0_2, %c0_3] : memref<128x128xbf16, #tpu.memory_space<vmem>>, vector<64x128xbf16>
    %cst_4 = arith.constant dense<0.000000e+00> : vector<64x128xf32>
    %5 = tpu.matmul %3, %4, %cst_4 {dimension_numbers = #tpu.dot_dimension_numbers<[1], [0], [0], [1], [0, 0, 1, 1], [], []>} : vector<64x64xbf16>, vector<64x128xbf16>, vector<64x128xf32> -> vector<64x128xf32>
    %6 = arith.addf %2, %5 : vector<64x128xf32>
    %7 = vector.extract_strided_slice %1 {offsets = [8, 0], sizes = [64, 64], strides = [1, 1]} : vector<72x64xbf16> to vector<64x64xbf16>
    %c64 = arith.constant 64 : index
    %c0_5 = arith.constant 0 : index
    %8 = vector.load %arg2[%c64, %c0_5] : memref<128x128xbf16, #tpu.memory_space<vmem>>, vector<64x128xbf16>
    %cst_6 = arith.constant dense<0.000000e+00> : vector<64x128xf32>
    %9 = tpu.matmul %7, %8, %cst_6 {dimension_numbers = #tpu.dot_dimension_numbers<[1], [0], [0], [1], [0, 0, 1, 1], [], []>} : vector<64x64xbf16>, vector<64x128xbf16>, vector<64x128xf32> -> vector<64x128xf32>
    %10 = arith.addf %6, %9 : vector<64x128xf32>
    %c0_7 = arith.constant 0 : index
    %c0_8 = arith.constant 0 : index
    %11 = vector.load %arg3[%c0_7, %c0_8] : memref<1x128xf32, #tpu.memory_space<vmem>>, vector<1x128xf32>
    %12 = vector.broadcast %11 : vector<1x128xf32> to vector<64x128xf32>
    %13 = arith.addf %10, %12 : vector<64x128xf32>
    %14 = arith.truncf %13 : vector<64x128xf32> to vector<64x128xbf16>
    %c0_9 = arith.constant 0 : index
    %c0_10 = arith.constant 0 : index
    %c0_11 = arith.constant 0 : index
    %15 = vector.load %arg4[%c0_9, %c0_10, %c0_11] : memref<1x64x128xbf16, #tpu.memory_space<vmem>>, vector<1x64x128xbf16>
    %16 = vector.shape_cast %15 : vector<1x64x128xbf16> to vector<64x128xbf16>
    %17 = vector.shape_cast %14 : vector<64x128xbf16> to vector<1x64x128xbf16>
    tpu.vector_store %arg4[%c0_9, %c0_10, %c0_11], %17 {strides = array<i32>} : memref<1x64x128xbf16, #tpu.memory_space<vmem>>, vector<1x64x128xbf16>,
    %cst_12 = arith.constant dense<0.000000e+00> : vector<128xf32>
    %18 = vector.multi_reduction <add>, %13, %cst_12 [0] : vector<64x128xf32> to vector<128xf32>
    %19 = vector.shape_cast %18 : vector<128xf32> to vector<1x128xf32>
    %c0_13 = arith.constant 0 : index
    %c0_14 = arith.constant 0 : index
    %c0_15 = arith.constant 0 : index
    %20 = vector.load %arg5[%c0_13, %c0_14, %c0_15] : memref<1x1x128xf32, #tpu.memory_space<vmem>>, vector<1x1x128xf32>
    %21 = vector.shape_cast %20 : vector<1x1x128xf32> to vector<1x128xf32>
    %22 = vector.shape_cast %19 : vector<1x128xf32> to vector<1x1x128xf32>
    tpu.vector_store %arg5[%c0_13, %c0_14, %c0_15], %22 {strides = array<i32>} : memref<1x1x128xf32, #tpu.memory_space<vmem>>, vector<1x1x128xf32>,
    %23 = arith.mulf %13, %13 : vector<64x128xf32>
    %cst_16 = arith.constant dense<0.000000e+00> : vector<128xf32>
    %24 = vector.multi_reduction <add>, %23, %cst_16 [0] : vector<64x128xf32> to vector<128xf32>
    %25 = vector.shape_cast %24 : vector<128xf32> to vector<1x128xf32>
    %c0_17 = arith.constant 0 : index
    %c0_18 = arith.constant 0 : index
    %c0_19 = arith.constant 0 : index
    %26 = vector.load %arg6[%c0_17, %c0_18, %c0_19] : memref<1x1x128xf32, #tpu.memory_space<vmem>>, vector<1x1x128xf32>
    %27 = vector.shape_cast %26 : vector<1x1x128xf32> to vector<1x128xf32>
    %28 = vector.shape_cast %25 : vector<1x128xf32> to vector<1x1x128xf32>
    tpu.vector_store %arg6[%c0_17, %c0_18, %c0_19], %28 {strides = array<i32>} : memref<1x1x128xf32, #tpu.memory_space<vmem>>, vector<1x1x128xf32>,
    return
  }
  func.func @transform_0(%arg0: i32) -> (i32, i32, i32) {
    %c0_i32 = arith.constant 0 : i32
    %c0_i32_0 = arith.constant 0 : i32
    %c0_i32_1 = arith.constant 0 : i32
    return %arg0, %c0_i32, %c0_i32_0 : i32, i32, i32
  }
  func.func @transform_1(%arg0: i32) -> (i32, i32) {
    %c0_i32 = arith.constant 0 : i32
    %c0_i32_0 = arith.constant 0 : i32
    %c0_i32_1 = arith.constant 0 : i32
    return %c0_i32, %c0_i32_0 : i32, i32
  }
  func.func @transform_2(%arg0: i32) -> (i32, i32) {
    %c0_i32 = arith.constant 0 : i32
    %c0_i32_0 = arith.constant 0 : i32
    %c0_i32_1 = arith.constant 0 : i32
    return %c0_i32, %c0_i32_0 : i32, i32
  }
  func.func @transform_3(%arg0: i32) -> (i32, i32, i32) {
    %c0_i32 = arith.constant 0 : i32
    %c0_i32_0 = arith.constant 0 : i32
    %c0_i32_1 = arith.constant 0 : i32
    return %arg0, %c0_i32, %c0_i32_0 : i32, i32, i32
  }
  func.func @transform_4(%arg0: i32) -> (i32, i32, i32) {
    %c0_i32 = arith.constant 0 : i32
    %c0_i32_0 = arith.constant 0 : i32
    %c0_i32_1 = arith.constant 0 : i32
    return %arg0, %c0_i32, %c0_i32_0 : i32, i32, i32
  }
  func.func @transform_5(%arg0: i32) -> (i32, i32, i32) {
    %c0_i32 = arith.constant 0 : i32
    %c0_i32_0 = arith.constant 0 : i32
    %c0_i32_1 = arith.constant 0 : i32
    return %arg0, %c0_i32, %c0_i32_0 : i32, i32, i32
  }
}

module attributes {stable_mosaic.version = 11 : i64} {
  func.func @_bn_apply_kernel(%arg0: i32, %arg1: memref<1x64x128xbf16, #tpu.memory_space<vmem>>, %arg2: memref<1x128xf32, #tpu.memory_space<vmem>>, %arg3: memref<1x128xf32, #tpu.memory_space<vmem>>, %arg4: memref<1x64x128xbf16, #tpu.memory_space<vmem>>) attributes {dimension_semantics = [#tpu.dimension_semantics<parallel>], iteration_bounds = array<i64: 2>, scalar_prefetch = 0 : i64, scratch_operands = 0 : i64, tpu.core_type = #tpu.core_type<tc>, window_params = [{transform_indices = @transform_0, window_bounds = array<i64: 1, 64, 128>}, {pipeline_mode = #tpu.pipeline_mode<synchronous>, transform_indices = @transform_1, window_bounds = array<i64: 1, 128>}, {pipeline_mode = #tpu.pipeline_mode<synchronous>, transform_indices = @transform_2, window_bounds = array<i64: 1, 128>}, {transform_indices = @transform_3, window_bounds = array<i64: 1, 64, 128>}]} {
    %c0 = arith.constant 0 : index
    %c0_0 = arith.constant 0 : index
    %c0_1 = arith.constant 0 : index
    %0 = vector.load %arg1[%c0, %c0_0, %c0_1] : memref<1x64x128xbf16, #tpu.memory_space<vmem>>, vector<1x64x128xbf16>
    %1 = vector.shape_cast %0 : vector<1x64x128xbf16> to vector<64x128xbf16>
    %2 = arith.extf %1 : vector<64x128xbf16> to vector<64x128xf32>
    %c0_2 = arith.constant 0 : index
    %c0_3 = arith.constant 0 : index
    %3 = vector.load %arg2[%c0_2, %c0_3] : memref<1x128xf32, #tpu.memory_space<vmem>>, vector<1x128xf32>
    %4 = vector.broadcast %3 : vector<1x128xf32> to vector<64x128xf32>
    %5 = arith.mulf %2, %4 : vector<64x128xf32>
    %c0_4 = arith.constant 0 : index
    %c0_5 = arith.constant 0 : index
    %6 = vector.load %arg3[%c0_4, %c0_5] : memref<1x128xf32, #tpu.memory_space<vmem>>, vector<1x128xf32>
    %7 = vector.broadcast %6 : vector<1x128xf32> to vector<64x128xf32>
    %8 = arith.addf %5, %7 : vector<64x128xf32>
    %cst = arith.constant 0.000000e+00 : f32
    %9 = vector.broadcast %cst : f32 to vector<64x128xf32>
    %10 = arith.maximumf %8, %9 : vector<64x128xf32>
    %11 = arith.truncf %10 : vector<64x128xf32> to vector<64x128xbf16>
    %c0_6 = arith.constant 0 : index
    %c0_7 = arith.constant 0 : index
    %c0_8 = arith.constant 0 : index
    %12 = vector.load %arg4[%c0_6, %c0_7, %c0_8] : memref<1x64x128xbf16, #tpu.memory_space<vmem>>, vector<1x64x128xbf16>
    %13 = vector.shape_cast %12 : vector<1x64x128xbf16> to vector<64x128xbf16>
    %14 = vector.shape_cast %11 : vector<64x128xbf16> to vector<1x64x128xbf16>
    tpu.vector_store %arg4[%c0_6, %c0_7, %c0_8], %14 {strides = array<i32>} : memref<1x64x128xbf16, #tpu.memory_space<vmem>>, vector<1x64x128xbf16>,
    return
  }
  func.func @transform_0(%arg0: i32) -> (i32, i32, i32) {
    %c0_i32 = arith.constant 0 : i32
    %c0_i32_0 = arith.constant 0 : i32
    %c0_i32_1 = arith.constant 0 : i32
    return %arg0, %c0_i32, %c0_i32_0 : i32, i32, i32
  }
  func.func @transform_1(%arg0: i32) -> (i32, i32) {
    %c0_i32 = arith.constant 0 : i32
    %c0_i32_0 = arith.constant 0 : i32
    %c0_i32_1 = arith.constant 0 : i32
    return %c0_i32, %c0_i32_0 : i32, i32
  }
  func.func @transform_2(%arg0: i32) -> (i32, i32) {
    %c0_i32 = arith.constant 0 : i32
    %c0_i32_0 = arith.constant 0 : i32
    %c0_i32_1 = arith.constant 0 : i32
    return %c0_i32, %c0_i32_0 : i32, i32
  }
  func.func @transform_3(%arg0: i32) -> (i32, i32, i32) {
    %c0_i32 = arith.constant 0 : i32
    %c0_i32_0 = arith.constant 0 : i32
    %c0_i32_1 = arith.constant 0 : i32
    return %arg0, %c0_i32, %c0_i32_0 : i32, i32, i32
  }
}

module attributes {stable_mosaic.version = 11 : i64} {
  func.func @_conv_kernel(%arg0: i32, %arg1: memref<1x20x1024xbf16, #tpu.memory_space<vmem>>, %arg2: memref<2048x128xbf16, #tpu.memory_space<vmem>>, %arg3: memref<1x128xf32, #tpu.memory_space<vmem>>, %arg4: memref<1x16x128xbf16, #tpu.memory_space<vmem>>, %arg5: memref<1x1x128xf32, #tpu.memory_space<vmem>>, %arg6: memref<1x1x128xf32, #tpu.memory_space<vmem>>) attributes {dimension_semantics = [#tpu.dimension_semantics<parallel>], iteration_bounds = array<i64: 2>, scalar_prefetch = 0 : i64, scratch_operands = 0 : i64, tpu.core_type = #tpu.core_type<tc>, window_params = [{transform_indices = @transform_0, window_bounds = array<i64: 1, 20, 1024>}, {pipeline_mode = #tpu.pipeline_mode<synchronous>, transform_indices = @transform_1, window_bounds = array<i64: 2048, 128>}, {pipeline_mode = #tpu.pipeline_mode<synchronous>, transform_indices = @transform_2, window_bounds = array<i64: 1, 128>}, {transform_indices = @transform_3, window_bounds = array<i64: 1, 16, 128>}, {transform_indices = @transform_4, window_bounds = array<i64: 1, 1, 128>}, {transform_indices = @transform_5, window_bounds = array<i64: 1, 1, 128>}]} {
    %c0 = arith.constant 0 : index
    %c0_0 = arith.constant 0 : index
    %c0_1 = arith.constant 0 : index
    %0 = vector.load %arg1[%c0, %c0_0, %c0_1] : memref<1x20x1024xbf16, #tpu.memory_space<vmem>>, vector<1x20x1024xbf16>
    %1 = vector.shape_cast %0 : vector<1x20x1024xbf16> to vector<20x1024xbf16>
    %cst = arith.constant 0.000000e+00 : f32
    %2 = vector.broadcast %cst : f32 to vector<16x128xf32>
    %3 = vector.extract_strided_slice %1 {offsets = [0, 0], sizes = [16, 1024], strides = [1, 1]} : vector<20x1024xbf16> to vector<16x1024xbf16>
    %c0_2 = arith.constant 0 : index
    %c0_3 = arith.constant 0 : index
    %4 = vector.load %arg2[%c0_2, %c0_3] : memref<2048x128xbf16, #tpu.memory_space<vmem>>, vector<1024x128xbf16>
    %cst_4 = arith.constant dense<0.000000e+00> : vector<16x128xf32>
    %5 = tpu.matmul %3, %4, %cst_4 {dimension_numbers = #tpu.dot_dimension_numbers<[1], [0], [0], [1], [0, 0, 1, 1], [], []>} : vector<16x1024xbf16>, vector<1024x128xbf16>, vector<16x128xf32> -> vector<16x128xf32>
    %6 = arith.addf %2, %5 : vector<16x128xf32>
    %7 = vector.extract_strided_slice %1 {offsets = [4, 0], sizes = [16, 1024], strides = [1, 1]} : vector<20x1024xbf16> to vector<16x1024xbf16>
    %c1024 = arith.constant 1024 : index
    %c0_5 = arith.constant 0 : index
    %8 = vector.load %arg2[%c1024, %c0_5] : memref<2048x128xbf16, #tpu.memory_space<vmem>>, vector<1024x128xbf16>
    %cst_6 = arith.constant dense<0.000000e+00> : vector<16x128xf32>
    %9 = tpu.matmul %7, %8, %cst_6 {dimension_numbers = #tpu.dot_dimension_numbers<[1], [0], [0], [1], [0, 0, 1, 1], [], []>} : vector<16x1024xbf16>, vector<1024x128xbf16>, vector<16x128xf32> -> vector<16x128xf32>
    %10 = arith.addf %6, %9 : vector<16x128xf32>
    %c0_7 = arith.constant 0 : index
    %c0_8 = arith.constant 0 : index
    %11 = vector.load %arg3[%c0_7, %c0_8] : memref<1x128xf32, #tpu.memory_space<vmem>>, vector<1x128xf32>
    %12 = vector.broadcast %11 : vector<1x128xf32> to vector<16x128xf32>
    %13 = arith.addf %10, %12 : vector<16x128xf32>
    %14 = arith.truncf %13 : vector<16x128xf32> to vector<16x128xbf16>
    %c0_9 = arith.constant 0 : index
    %c0_10 = arith.constant 0 : index
    %c0_11 = arith.constant 0 : index
    %15 = vector.load %arg4[%c0_9, %c0_10, %c0_11] : memref<1x16x128xbf16, #tpu.memory_space<vmem>>, vector<1x16x128xbf16>
    %16 = vector.shape_cast %15 : vector<1x16x128xbf16> to vector<16x128xbf16>
    %17 = vector.shape_cast %14 : vector<16x128xbf16> to vector<1x16x128xbf16>
    tpu.vector_store %arg4[%c0_9, %c0_10, %c0_11], %17 {strides = array<i32>} : memref<1x16x128xbf16, #tpu.memory_space<vmem>>, vector<1x16x128xbf16>,
    %cst_12 = arith.constant dense<0.000000e+00> : vector<128xf32>
    %18 = vector.multi_reduction <add>, %13, %cst_12 [0] : vector<16x128xf32> to vector<128xf32>
    %19 = vector.shape_cast %18 : vector<128xf32> to vector<1x128xf32>
    %c0_13 = arith.constant 0 : index
    %c0_14 = arith.constant 0 : index
    %c0_15 = arith.constant 0 : index
    %20 = vector.load %arg5[%c0_13, %c0_14, %c0_15] : memref<1x1x128xf32, #tpu.memory_space<vmem>>, vector<1x1x128xf32>
    %21 = vector.shape_cast %20 : vector<1x1x128xf32> to vector<1x128xf32>
    %22 = vector.shape_cast %19 : vector<1x128xf32> to vector<1x1x128xf32>
    tpu.vector_store %arg5[%c0_13, %c0_14, %c0_15], %22 {strides = array<i32>} : memref<1x1x128xf32, #tpu.memory_space<vmem>>, vector<1x1x128xf32>,
    %23 = arith.mulf %13, %13 : vector<16x128xf32>
    %cst_16 = arith.constant dense<0.000000e+00> : vector<128xf32>
    %24 = vector.multi_reduction <add>, %23, %cst_16 [0] : vector<16x128xf32> to vector<128xf32>
    %25 = vector.shape_cast %24 : vector<128xf32> to vector<1x128xf32>
    %c0_17 = arith.constant 0 : index
    %c0_18 = arith.constant 0 : index
    %c0_19 = arith.constant 0 : index
    %26 = vector.load %arg6[%c0_17, %c0_18, %c0_19] : memref<1x1x128xf32, #tpu.memory_space<vmem>>, vector<1x1x128xf32>
    %27 = vector.shape_cast %26 : vector<1x1x128xf32> to vector<1x128xf32>
    %28 = vector.shape_cast %25 : vector<1x128xf32> to vector<1x1x128xf32>
    tpu.vector_store %arg6[%c0_17, %c0_18, %c0_19], %28 {strides = array<i32>} : memref<1x1x128xf32, #tpu.memory_space<vmem>>, vector<1x1x128xf32>,
    return
  }
  func.func @transform_0(%arg0: i32) -> (i32, i32, i32) {
    %c0_i32 = arith.constant 0 : i32
    %c0_i32_0 = arith.constant 0 : i32
    %c0_i32_1 = arith.constant 0 : i32
    return %arg0, %c0_i32, %c0_i32_0 : i32, i32, i32
  }
  func.func @transform_1(%arg0: i32) -> (i32, i32) {
    %c0_i32 = arith.constant 0 : i32
    %c0_i32_0 = arith.constant 0 : i32
    %c0_i32_1 = arith.constant 0 : i32
    return %c0_i32, %c0_i32_0 : i32, i32
  }
  func.func @transform_2(%arg0: i32) -> (i32, i32) {
    %c0_i32 = arith.constant 0 : i32
    %c0_i32_0 = arith.constant 0 : i32
    %c0_i32_1 = arith.constant 0 : i32
    return %c0_i32, %c0_i32_0 : i32, i32
  }
  func.func @transform_3(%arg0: i32) -> (i32, i32, i32) {
    %c0_i32 = arith.constant 0 : i32
    %c0_i32_0 = arith.constant 0 : i32
    %c0_i32_1 = arith.constant 0 : i32
    return %arg0, %c0_i32, %c0_i32_0 : i32, i32, i32
  }
  func.func @transform_4(%arg0: i32) -> (i32, i32, i32) {
    %c0_i32 = arith.constant 0 : i32
    %c0_i32_0 = arith.constant 0 : i32
    %c0_i32_1 = arith.constant 0 : i32
    return %arg0, %c0_i32, %c0_i32_0 : i32, i32, i32
  }
  func.func @transform_5(%arg0: i32) -> (i32, i32, i32) {
    %c0_i32 = arith.constant 0 : i32
    %c0_i32_0 = arith.constant 0 : i32
    %c0_i32_1 = arith.constant 0 : i32
    return %arg0, %c0_i32, %c0_i32_0 : i32, i32, i32
  }
}

module attributes {stable_mosaic.version = 11 : i64} {
  func.func @_bn_apply_kernel(%arg0: i32, %arg1: memref<1x16x128xbf16, #tpu.memory_space<vmem>>, %arg2: memref<1x128xf32, #tpu.memory_space<vmem>>, %arg3: memref<1x128xf32, #tpu.memory_space<vmem>>, %arg4: memref<1x16x128xbf16, #tpu.memory_space<vmem>>) attributes {dimension_semantics = [#tpu.dimension_semantics<parallel>], iteration_bounds = array<i64: 2>, scalar_prefetch = 0 : i64, scratch_operands = 0 : i64, tpu.core_type = #tpu.core_type<tc>, window_params = [{transform_indices = @transform_0, window_bounds = array<i64: 1, 16, 128>}, {pipeline_mode = #tpu.pipeline_mode<synchronous>, transform_indices = @transform_1, window_bounds = array<i64: 1, 128>}, {pipeline_mode = #tpu.pipeline_mode<synchronous>, transform_indices = @transform_2, window_bounds = array<i64: 1, 128>}, {transform_indices = @transform_3, window_bounds = array<i64: 1, 16, 128>}]} {
    %c0 = arith.constant 0 : index
    %c0_0 = arith.constant 0 : index
    %c0_1 = arith.constant 0 : index
    %0 = vector.load %arg1[%c0, %c0_0, %c0_1] : memref<1x16x128xbf16, #tpu.memory_space<vmem>>, vector<1x16x128xbf16>
    %1 = vector.shape_cast %0 : vector<1x16x128xbf16> to vector<16x128xbf16>
    %2 = arith.extf %1 : vector<16x128xbf16> to vector<16x128xf32>
    %c0_2 = arith.constant 0 : index
    %c0_3 = arith.constant 0 : index
    %3 = vector.load %arg2[%c0_2, %c0_3] : memref<1x128xf32, #tpu.memory_space<vmem>>, vector<1x128xf32>
    %4 = vector.broadcast %3 : vector<1x128xf32> to vector<16x128xf32>
    %5 = arith.mulf %2, %4 : vector<16x128xf32>
    %c0_4 = arith.constant 0 : index
    %c0_5 = arith.constant 0 : index
    %6 = vector.load %arg3[%c0_4, %c0_5] : memref<1x128xf32, #tpu.memory_space<vmem>>, vector<1x128xf32>
    %7 = vector.broadcast %6 : vector<1x128xf32> to vector<16x128xf32>
    %8 = arith.addf %5, %7 : vector<16x128xf32>
    %9 = arith.truncf %8 : vector<16x128xf32> to vector<16x128xbf16>
    %c0_6 = arith.constant 0 : index
    %c0_7 = arith.constant 0 : index
    %c0_8 = arith.constant 0 : index
    %10 = vector.load %arg4[%c0_6, %c0_7, %c0_8] : memref<1x16x128xbf16, #tpu.memory_space<vmem>>, vector<1x16x128xbf16>
    %11 = vector.shape_cast %10 : vector<1x16x128xbf16> to vector<16x128xbf16>
    %12 = vector.shape_cast %9 : vector<16x128xbf16> to vector<1x16x128xbf16>
    tpu.vector_store %arg4[%c0_6, %c0_7, %c0_8], %12 {strides = array<i32>} : memref<1x16x128xbf16, #tpu.memory_space<vmem>>, vector<1x16x128xbf16>,
    return
  }
  func.func @transform_0(%arg0: i32) -> (i32, i32, i32) {
    %c0_i32 = arith.constant 0 : i32
    %c0_i32_0 = arith.constant 0 : i32
    %c0_i32_1 = arith.constant 0 : i32
    return %arg0, %c0_i32, %c0_i32_0 : i32, i32, i32
  }
  func.func @transform_1(%arg0: i32) -> (i32, i32) {
    %c0_i32 = arith.constant 0 : i32
    %c0_i32_0 = arith.constant 0 : i32
    %c0_i32_1 = arith.constant 0 : i32
    return %c0_i32, %c0_i32_0 : i32, i32
  }
  func.func @transform_2(%arg0: i32) -> (i32, i32) {
    %c0_i32 = arith.constant 0 : i32
    %c0_i32_0 = arith.constant 0 : i32
    %c0_i32_1 = arith.constant 0 : i32
    return %c0_i32, %c0_i32_0 : i32, i32
  }
  func.func @transform_3(%arg0: i32) -> (i32, i32, i32) {
    %c0_i32 = arith.constant 0 : i32
    %c0_i32_0 = arith.constant 0 : i32
    %c0_i32_1 = arith.constant 0 : i32
    return %arg0, %c0_i32, %c0_i32_0 : i32, i32, i32
  }
}

module attributes {stable_mosaic.version = 11 : i64} {
  func.func @_conv_kernel(%arg0: i32, %arg1: memref<1x24x384xbf16, #tpu.memory_space<vmem>>, %arg2: memref<1152x128xbf16, #tpu.memory_space<vmem>>, %arg3: memref<1x128xf32, #tpu.memory_space<vmem>>, %arg4: memref<1x16x128xbf16, #tpu.memory_space<vmem>>, %arg5: memref<1x1x128xf32, #tpu.memory_space<vmem>>, %arg6: memref<1x1x128xf32, #tpu.memory_space<vmem>>) attributes {dimension_semantics = [#tpu.dimension_semantics<parallel>], iteration_bounds = array<i64: 2>, scalar_prefetch = 0 : i64, scratch_operands = 0 : i64, tpu.core_type = #tpu.core_type<tc>, window_params = [{transform_indices = @transform_0, window_bounds = array<i64: 1, 24, 384>}, {pipeline_mode = #tpu.pipeline_mode<synchronous>, transform_indices = @transform_1, window_bounds = array<i64: 1152, 128>}, {pipeline_mode = #tpu.pipeline_mode<synchronous>, transform_indices = @transform_2, window_bounds = array<i64: 1, 128>}, {transform_indices = @transform_3, window_bounds = array<i64: 1, 16, 128>}, {transform_indices = @transform_4, window_bounds = array<i64: 1, 1, 128>}, {transform_indices = @transform_5, window_bounds = array<i64: 1, 1, 128>}]} {
    %c0 = arith.constant 0 : index
    %c0_0 = arith.constant 0 : index
    %c0_1 = arith.constant 0 : index
    %0 = vector.load %arg1[%c0, %c0_0, %c0_1] : memref<1x24x384xbf16, #tpu.memory_space<vmem>>, vector<1x24x384xbf16>
    %1 = vector.shape_cast %0 : vector<1x24x384xbf16> to vector<24x384xbf16>
    %cst = arith.constant 0.000000e+00 : bf16
    %2 = vector.broadcast %cst : bf16 to vector<24x384xbf16>
    %3 = arith.maximumf %1, %2 : vector<24x384xbf16>
    %cst_2 = arith.constant 0.000000e+00 : f32
    %4 = vector.broadcast %cst_2 : f32 to vector<16x128xf32>
    %5 = vector.extract_strided_slice %3 {offsets = [0, 0], sizes = [16, 384], strides = [1, 1]} : vector<24x384xbf16> to vector<16x384xbf16>
    %c0_3 = arith.constant 0 : index
    %c0_4 = arith.constant 0 : index
    %6 = vector.load %arg2[%c0_3, %c0_4] : memref<1152x128xbf16, #tpu.memory_space<vmem>>, vector<384x128xbf16>
    %cst_5 = arith.constant dense<0.000000e+00> : vector<16x128xf32>
    %7 = tpu.matmul %5, %6, %cst_5 {dimension_numbers = #tpu.dot_dimension_numbers<[1], [0], [0], [1], [0, 0, 1, 1], [], []>} : vector<16x384xbf16>, vector<384x128xbf16>, vector<16x128xf32> -> vector<16x128xf32>
    %8 = arith.addf %4, %7 : vector<16x128xf32>
    %9 = vector.extract_strided_slice %3 {offsets = [4, 0], sizes = [16, 384], strides = [1, 1]} : vector<24x384xbf16> to vector<16x384xbf16>
    %c384 = arith.constant 384 : index
    %c0_6 = arith.constant 0 : index
    %10 = vector.load %arg2[%c384, %c0_6] : memref<1152x128xbf16, #tpu.memory_space<vmem>>, vector<384x128xbf16>
    %cst_7 = arith.constant dense<0.000000e+00> : vector<16x128xf32>
    %11 = tpu.matmul %9, %10, %cst_7 {dimension_numbers = #tpu.dot_dimension_numbers<[1], [0], [0], [1], [0, 0, 1, 1], [], []>} : vector<16x384xbf16>, vector<384x128xbf16>, vector<16x128xf32> -> vector<16x128xf32>
    %12 = arith.addf %8, %11 : vector<16x128xf32>
    %13 = vector.extract_strided_slice %3 {offsets = [8, 0], sizes = [16, 384], strides = [1, 1]} : vector<24x384xbf16> to vector<16x384xbf16>
    %c768 = arith.constant 768 : index
    %c0_8 = arith.constant 0 : index
    %14 = vector.load %arg2[%c768, %c0_8] : memref<1152x128xbf16, #tpu.memory_space<vmem>>, vector<384x128xbf16>
    %cst_9 = arith.constant dense<0.000000e+00> : vector<16x128xf32>
    %15 = tpu.matmul %13, %14, %cst_9 {dimension_numbers = #tpu.dot_dimension_numbers<[1], [0], [0], [1], [0, 0, 1, 1], [], []>} : vector<16x384xbf16>, vector<384x128xbf16>, vector<16x128xf32> -> vector<16x128xf32>
    %16 = arith.addf %12, %15 : vector<16x128xf32>
    %c0_10 = arith.constant 0 : index
    %c0_11 = arith.constant 0 : index
    %17 = vector.load %arg3[%c0_10, %c0_11] : memref<1x128xf32, #tpu.memory_space<vmem>>, vector<1x128xf32>
    %18 = vector.broadcast %17 : vector<1x128xf32> to vector<16x128xf32>
    %19 = arith.addf %16, %18 : vector<16x128xf32>
    %20 = arith.truncf %19 : vector<16x128xf32> to vector<16x128xbf16>
    %c0_12 = arith.constant 0 : index
    %c0_13 = arith.constant 0 : index
    %c0_14 = arith.constant 0 : index
    %21 = vector.load %arg4[%c0_12, %c0_13, %c0_14] : memref<1x16x128xbf16, #tpu.memory_space<vmem>>, vector<1x16x128xbf16>
    %22 = vector.shape_cast %21 : vector<1x16x128xbf16> to vector<16x128xbf16>
    %23 = vector.shape_cast %20 : vector<16x128xbf16> to vector<1x16x128xbf16>
    tpu.vector_store %arg4[%c0_12, %c0_13, %c0_14], %23 {strides = array<i32>} : memref<1x16x128xbf16, #tpu.memory_space<vmem>>, vector<1x16x128xbf16>,
    %cst_15 = arith.constant dense<0.000000e+00> : vector<128xf32>
    %24 = vector.multi_reduction <add>, %19, %cst_15 [0] : vector<16x128xf32> to vector<128xf32>
    %25 = vector.shape_cast %24 : vector<128xf32> to vector<1x128xf32>
    %c0_16 = arith.constant 0 : index
    %c0_17 = arith.constant 0 : index
    %c0_18 = arith.constant 0 : index
    %26 = vector.load %arg5[%c0_16, %c0_17, %c0_18] : memref<1x1x128xf32, #tpu.memory_space<vmem>>, vector<1x1x128xf32>
    %27 = vector.shape_cast %26 : vector<1x1x128xf32> to vector<1x128xf32>
    %28 = vector.shape_cast %25 : vector<1x128xf32> to vector<1x1x128xf32>
    tpu.vector_store %arg5[%c0_16, %c0_17, %c0_18], %28 {strides = array<i32>} : memref<1x1x128xf32, #tpu.memory_space<vmem>>, vector<1x1x128xf32>,
    %29 = arith.mulf %19, %19 : vector<16x128xf32>
    %cst_19 = arith.constant dense<0.000000e+00> : vector<128xf32>
    %30 = vector.multi_reduction <add>, %29, %cst_19 [0] : vector<16x128xf32> to vector<128xf32>
    %31 = vector.shape_cast %30 : vector<128xf32> to vector<1x128xf32>
    %c0_20 = arith.constant 0 : index
    %c0_21 = arith.constant 0 : index
    %c0_22 = arith.constant 0 : index
    %32 = vector.load %arg6[%c0_20, %c0_21, %c0_22] : memref<1x1x128xf32, #tpu.memory_space<vmem>>, vector<1x1x128xf32>
    %33 = vector.shape_cast %32 : vector<1x1x128xf32> to vector<1x128xf32>
    %34 = vector.shape_cast %31 : vector<1x128xf32> to vector<1x1x128xf32>
    tpu.vector_store %arg6[%c0_20, %c0_21, %c0_22], %34 {strides = array<i32>} : memref<1x1x128xf32, #tpu.memory_space<vmem>>, vector<1x1x128xf32>,
    return
  }
  func.func @transform_0(%arg0: i32) -> (i32, i32, i32) {
    %c0_i32 = arith.constant 0 : i32
    %c0_i32_0 = arith.constant 0 : i32
    %c0_i32_1 = arith.constant 0 : i32
    return %arg0, %c0_i32, %c0_i32_0 : i32, i32, i32
  }
  func.func @transform_1(%arg0: i32) -> (i32, i32) {
    %c0_i32 = arith.constant 0 : i32
    %c0_i32_0 = arith.constant 0 : i32
    %c0_i32_1 = arith.constant 0 : i32
    return %c0_i32, %c0_i32_0 : i32, i32
  }
  func.func @transform_2(%arg0: i32) -> (i32, i32) {
    %c0_i32 = arith.constant 0 : i32
    %c0_i32_0 = arith.constant 0 : i32
    %c0_i32_1 = arith.constant 0 : i32
    return %c0_i32, %c0_i32_0 : i32, i32
  }
  func.func @transform_3(%arg0: i32) -> (i32, i32, i32) {
    %c0_i32 = arith.constant 0 : i32
    %c0_i32_0 = arith.constant 0 : i32
    %c0_i32_1 = arith.constant 0 : i32
    return %arg0, %c0_i32, %c0_i32_0 : i32, i32, i32
  }
  func.func @transform_4(%arg0: i32) -> (i32, i32, i32) {
    %c0_i32 = arith.constant 0 : i32
    %c0_i32_0 = arith.constant 0 : i32
    %c0_i32_1 = arith.constant 0 : i32
    return %arg0, %c0_i32, %c0_i32_0 : i32, i32, i32
  }
  func.func @transform_5(%arg0: i32) -> (i32, i32, i32) {
    %c0_i32 = arith.constant 0 : i32
    %c0_i32_0 = arith.constant 0 : i32
    %c0_i32_1 = arith.constant 0 : i32
    return %arg0, %c0_i32, %c0_i32_0 : i32, i32, i32
  }
}

module attributes {stable_mosaic.version = 11 : i64} {
  func.func @_bn_apply_kernel(%arg0: i32, %arg1: memref<1x16x128xbf16, #tpu.memory_space<vmem>>, %arg2: memref<1x128xf32, #tpu.memory_space<vmem>>, %arg3: memref<1x128xf32, #tpu.memory_space<vmem>>, %arg4: memref<1x16x128xbf16, #tpu.memory_space<vmem>>, %arg5: memref<1x16x128xbf16, #tpu.memory_space<vmem>>) attributes {dimension_semantics = [#tpu.dimension_semantics<parallel>], iteration_bounds = array<i64: 2>, scalar_prefetch = 0 : i64, scratch_operands = 0 : i64, tpu.core_type = #tpu.core_type<tc>, window_params = [{transform_indices = @transform_0, window_bounds = array<i64: 1, 16, 128>}, {pipeline_mode = #tpu.pipeline_mode<synchronous>, transform_indices = @transform_1, window_bounds = array<i64: 1, 128>}, {pipeline_mode = #tpu.pipeline_mode<synchronous>, transform_indices = @transform_2, window_bounds = array<i64: 1, 128>}, {transform_indices = @transform_3, window_bounds = array<i64: 1, 16, 128>}, {transform_indices = @transform_4, window_bounds = array<i64: 1, 16, 128>}]} {
    %c0 = arith.constant 0 : index
    %c0_0 = arith.constant 0 : index
    %c0_1 = arith.constant 0 : index
    %0 = vector.load %arg1[%c0, %c0_0, %c0_1] : memref<1x16x128xbf16, #tpu.memory_space<vmem>>, vector<1x16x128xbf16>
    %1 = vector.shape_cast %0 : vector<1x16x128xbf16> to vector<16x128xbf16>
    %2 = arith.extf %1 : vector<16x128xbf16> to vector<16x128xf32>
    %c0_2 = arith.constant 0 : index
    %c0_3 = arith.constant 0 : index
    %3 = vector.load %arg2[%c0_2, %c0_3] : memref<1x128xf32, #tpu.memory_space<vmem>>, vector<1x128xf32>
    %4 = vector.broadcast %3 : vector<1x128xf32> to vector<16x128xf32>
    %5 = arith.mulf %2, %4 : vector<16x128xf32>
    %c0_4 = arith.constant 0 : index
    %c0_5 = arith.constant 0 : index
    %6 = vector.load %arg3[%c0_4, %c0_5] : memref<1x128xf32, #tpu.memory_space<vmem>>, vector<1x128xf32>
    %7 = vector.broadcast %6 : vector<1x128xf32> to vector<16x128xf32>
    %8 = arith.addf %5, %7 : vector<16x128xf32>
    %c0_6 = arith.constant 0 : index
    %c0_7 = arith.constant 0 : index
    %c0_8 = arith.constant 0 : index
    %9 = vector.load %arg4[%c0_6, %c0_7, %c0_8] : memref<1x16x128xbf16, #tpu.memory_space<vmem>>, vector<1x16x128xbf16>
    %10 = vector.shape_cast %9 : vector<1x16x128xbf16> to vector<16x128xbf16>
    %11 = arith.extf %10 : vector<16x128xbf16> to vector<16x128xf32>
    %12 = arith.addf %8, %11 : vector<16x128xf32>
    %13 = arith.truncf %12 : vector<16x128xf32> to vector<16x128xbf16>
    %c0_9 = arith.constant 0 : index
    %c0_10 = arith.constant 0 : index
    %c0_11 = arith.constant 0 : index
    %14 = vector.load %arg5[%c0_9, %c0_10, %c0_11] : memref<1x16x128xbf16, #tpu.memory_space<vmem>>, vector<1x16x128xbf16>
    %15 = vector.shape_cast %14 : vector<1x16x128xbf16> to vector<16x128xbf16>
    %16 = vector.shape_cast %13 : vector<16x128xbf16> to vector<1x16x128xbf16>
    tpu.vector_store %arg5[%c0_9, %c0_10, %c0_11], %16 {strides = array<i32>} : memref<1x16x128xbf16, #tpu.memory_space<vmem>>, vector<1x16x128xbf16>,
    return
  }
  func.func @transform_0(%arg0: i32) -> (i32, i32, i32) {
    %c0_i32 = arith.constant 0 : i32
    %c0_i32_0 = arith.constant 0 : i32
    %c0_i32_1 = arith.constant 0 : i32
    return %arg0, %c0_i32, %c0_i32_0 : i32, i32, i32
  }
  func.func @transform_1(%arg0: i32) -> (i32, i32) {
    %c0_i32 = arith.constant 0 : i32
    %c0_i32_0 = arith.constant 0 : i32
    %c0_i32_1 = arith.constant 0 : i32
    return %c0_i32, %c0_i32_0 : i32, i32
  }
  func.func @transform_2(%arg0: i32) -> (i32, i32) {
    %c0_i32 = arith.constant 0 : i32
    %c0_i32_0 = arith.constant 0 : i32
    %c0_i32_1 = arith.constant 0 : i32
    return %c0_i32, %c0_i32_0 : i32, i32
  }
  func.func @transform_3(%arg0: i32) -> (i32, i32, i32) {
    %c0_i32 = arith.constant 0 : i32
    %c0_i32_0 = arith.constant 0 : i32
    %c0_i32_1 = arith.constant 0 : i32
    return %arg0, %c0_i32, %c0_i32_0 : i32, i32, i32
  }
  func.func @transform_4(%arg0: i32) -> (i32, i32, i32) {
    %c0_i32 = arith.constant 0 : i32
    %c0_i32_0 = arith.constant 0 : i32
    %c0_i32_1 = arith.constant 0 : i32
    return %arg0, %c0_i32, %c0_i32_0 : i32, i32, i32
  }
}

module attributes {stable_mosaic.version = 11 : i64} {
  func.func @_bn_apply_kernel(%arg0: i32, %arg1: memref<1x16x128xbf16, #tpu.memory_space<vmem>>, %arg2: memref<1x128xf32, #tpu.memory_space<vmem>>, %arg3: memref<1x128xf32, #tpu.memory_space<vmem>>, %arg4: memref<128x128xbf16, #tpu.memory_space<vmem>>, %arg5: memref<1x128xf32, #tpu.memory_space<vmem>>, %arg6: memref<1x16x128xbf16, #tpu.memory_space<vmem>>, %arg7: memref<1x1x128xf32, #tpu.memory_space<vmem>>, %arg8: memref<1x1x128xf32, #tpu.memory_space<vmem>>) attributes {dimension_semantics = [#tpu.dimension_semantics<parallel>], iteration_bounds = array<i64: 2>, scalar_prefetch = 0 : i64, scratch_operands = 0 : i64, tpu.core_type = #tpu.core_type<tc>, window_params = [{transform_indices = @transform_0, window_bounds = array<i64: 1, 16, 128>}, {pipeline_mode = #tpu.pipeline_mode<synchronous>, transform_indices = @transform_1, window_bounds = array<i64: 1, 128>}, {pipeline_mode = #tpu.pipeline_mode<synchronous>, transform_indices = @transform_2, window_bounds = array<i64: 1, 128>}, {pipeline_mode = #tpu.pipeline_mode<synchronous>, transform_indices = @transform_3, window_bounds = array<i64: 128, 128>}, {pipeline_mode = #tpu.pipeline_mode<synchronous>, transform_indices = @transform_4, window_bounds = array<i64: 1, 128>}, {transform_indices = @transform_5, window_bounds = array<i64: 1, 16, 128>}, {transform_indices = @transform_6, window_bounds = array<i64: 1, 1, 128>}, {transform_indices = @transform_7, window_bounds = array<i64: 1, 1, 128>}]} {
    %c0 = arith.constant 0 : index
    %c0_0 = arith.constant 0 : index
    %c0_1 = arith.constant 0 : index
    %0 = vector.load %arg1[%c0, %c0_0, %c0_1] : memref<1x16x128xbf16, #tpu.memory_space<vmem>>, vector<1x16x128xbf16>
    %1 = vector.shape_cast %0 : vector<1x16x128xbf16> to vector<16x128xbf16>
    %2 = arith.extf %1 : vector<16x128xbf16> to vector<16x128xf32>
    %c0_2 = arith.constant 0 : index
    %c0_3 = arith.constant 0 : index
    %3 = vector.load %arg2[%c0_2, %c0_3] : memref<1x128xf32, #tpu.memory_space<vmem>>, vector<1x128xf32>
    %4 = vector.broadcast %3 : vector<1x128xf32> to vector<16x128xf32>
    %5 = arith.mulf %2, %4 : vector<16x128xf32>
    %c0_4 = arith.constant 0 : index
    %c0_5 = arith.constant 0 : index
    %6 = vector.load %arg3[%c0_4, %c0_5] : memref<1x128xf32, #tpu.memory_space<vmem>>, vector<1x128xf32>
    %7 = vector.broadcast %6 : vector<1x128xf32> to vector<16x128xf32>
    %8 = arith.addf %5, %7 : vector<16x128xf32>
    %cst = arith.constant 0.000000e+00 : f32
    %9 = vector.broadcast %cst : f32 to vector<16x128xf32>
    %10 = arith.maximumf %8, %9 : vector<16x128xf32>
    %11 = arith.truncf %10 : vector<16x128xf32> to vector<16x128xbf16>
    %c0_6 = arith.constant 0 : index
    %c0_7 = arith.constant 0 : index
    %12 = vector.load %arg4[%c0_6, %c0_7] : memref<128x128xbf16, #tpu.memory_space<vmem>>, vector<128x128xbf16>
    %cst_8 = arith.constant dense<0.000000e+00> : vector<16x128xf32>
    %13 = tpu.matmul %11, %12, %cst_8 {dimension_numbers = #tpu.dot_dimension_numbers<[1], [0], [0], [1], [0, 0, 1, 1], [], []>} : vector<16x128xbf16>, vector<128x128xbf16>, vector<16x128xf32> -> vector<16x128xf32>
    %c0_9 = arith.constant 0 : index
    %c0_10 = arith.constant 0 : index
    %14 = vector.load %arg5[%c0_9, %c0_10] : memref<1x128xf32, #tpu.memory_space<vmem>>, vector<1x128xf32>
    %15 = vector.broadcast %14 : vector<1x128xf32> to vector<16x128xf32>
    %16 = arith.addf %13, %15 : vector<16x128xf32>
    %17 = arith.truncf %16 : vector<16x128xf32> to vector<16x128xbf16>
    %c0_11 = arith.constant 0 : index
    %c0_12 = arith.constant 0 : index
    %c0_13 = arith.constant 0 : index
    %18 = vector.load %arg6[%c0_11, %c0_12, %c0_13] : memref<1x16x128xbf16, #tpu.memory_space<vmem>>, vector<1x16x128xbf16>
    %19 = vector.shape_cast %18 : vector<1x16x128xbf16> to vector<16x128xbf16>
    %20 = vector.shape_cast %17 : vector<16x128xbf16> to vector<1x16x128xbf16>
    tpu.vector_store %arg6[%c0_11, %c0_12, %c0_13], %20 {strides = array<i32>} : memref<1x16x128xbf16, #tpu.memory_space<vmem>>, vector<1x16x128xbf16>,
    %cst_14 = arith.constant dense<0.000000e+00> : vector<128xf32>
    %21 = vector.multi_reduction <add>, %16, %cst_14 [0] : vector<16x128xf32> to vector<128xf32>
    %22 = vector.shape_cast %21 : vector<128xf32> to vector<1x128xf32>
    %c0_15 = arith.constant 0 : index
    %c0_16 = arith.constant 0 : index
    %c0_17 = arith.constant 0 : index
    %23 = vector.load %arg7[%c0_15, %c0_16, %c0_17] : memref<1x1x128xf32, #tpu.memory_space<vmem>>, vector<1x1x128xf32>
    %24 = vector.shape_cast %23 : vector<1x1x128xf32> to vector<1x128xf32>
    %25 = vector.shape_cast %22 : vector<1x128xf32> to vector<1x1x128xf32>
    tpu.vector_store %arg7[%c0_15, %c0_16, %c0_17], %25 {strides = array<i32>} : memref<1x1x128xf32, #tpu.memory_space<vmem>>, vector<1x1x128xf32>,
    %26 = arith.mulf %16, %16 : vector<16x128xf32>
    %cst_18 = arith.constant dense<0.000000e+00> : vector<128xf32>
    %27 = vector.multi_reduction <add>, %26, %cst_18 [0] : vector<16x128xf32> to vector<128xf32>
    %28 = vector.shape_cast %27 : vector<128xf32> to vector<1x128xf32>
    %c0_19 = arith.constant 0 : index
    %c0_20 = arith.constant 0 : index
    %c0_21 = arith.constant 0 : index
    %29 = vector.load %arg8[%c0_19, %c0_20, %c0_21] : memref<1x1x128xf32, #tpu.memory_space<vmem>>, vector<1x1x128xf32>
    %30 = vector.shape_cast %29 : vector<1x1x128xf32> to vector<1x128xf32>
    %31 = vector.shape_cast %28 : vector<1x128xf32> to vector<1x1x128xf32>
    tpu.vector_store %arg8[%c0_19, %c0_20, %c0_21], %31 {strides = array<i32>} : memref<1x1x128xf32, #tpu.memory_space<vmem>>, vector<1x1x128xf32>,
    return
  }
  func.func @transform_0(%arg0: i32) -> (i32, i32, i32) {
    %c0_i32 = arith.constant 0 : i32
    %c0_i32_0 = arith.constant 0 : i32
    %c0_i32_1 = arith.constant 0 : i32
    return %arg0, %c0_i32, %c0_i32_0 : i32, i32, i32
  }
  func.func @transform_1(%arg0: i32) -> (i32, i32) {
    %c0_i32 = arith.constant 0 : i32
    %c0_i32_0 = arith.constant 0 : i32
    %c0_i32_1 = arith.constant 0 : i32
    return %c0_i32, %c0_i32_0 : i32, i32
  }
  func.func @transform_2(%arg0: i32) -> (i32, i32) {
    %c0_i32 = arith.constant 0 : i32
    %c0_i32_0 = arith.constant 0 : i32
    %c0_i32_1 = arith.constant 0 : i32
    return %c0_i32, %c0_i32_0 : i32, i32
  }
  func.func @transform_3(%arg0: i32) -> (i32, i32) {
    %c0_i32 = arith.constant 0 : i32
    %c0_i32_0 = arith.constant 0 : i32
    %c0_i32_1 = arith.constant 0 : i32
    return %c0_i32, %c0_i32_0 : i32, i32
  }
  func.func @transform_4(%arg0: i32) -> (i32, i32) {
    %c0_i32 = arith.constant 0 : i32
    %c0_i32_0 = arith.constant 0 : i32
    %c0_i32_1 = arith.constant 0 : i32
    return %c0_i32, %c0_i32_0 : i32, i32
  }
  func.func @transform_5(%arg0: i32) -> (i32, i32, i32) {
    %c0_i32 = arith.constant 0 : i32
    %c0_i32_0 = arith.constant 0 : i32
    %c0_i32_1 = arith.constant 0 : i32
    return %arg0, %c0_i32, %c0_i32_0 : i32, i32, i32
  }
  func.func @transform_6(%arg0: i32) -> (i32, i32, i32) {
    %c0_i32 = arith.constant 0 : i32
    %c0_i32_0 = arith.constant 0 : i32
    %c0_i32_1 = arith.constant 0 : i32
    return %arg0, %c0_i32, %c0_i32_0 : i32, i32, i32
  }
  func.func @transform_7(%arg0: i32) -> (i32, i32, i32) {
    %c0_i32 = arith.constant 0 : i32
    %c0_i32_0 = arith.constant 0 : i32
    %c0_i32_1 = arith.constant 0 : i32
    return %arg0, %c0_i32, %c0_i32_0 : i32, i32, i32
  }
}

module attributes {stable_mosaic.version = 11 : i64} {
  func.func @_bn_apply_kernel(%arg0: i32, %arg1: memref<1x16x128xbf16, #tpu.memory_space<vmem>>, %arg2: memref<1x128xf32, #tpu.memory_space<vmem>>, %arg3: memref<1x128xf32, #tpu.memory_space<vmem>>, %arg4: memref<1x16x128xbf16, #tpu.memory_space<vmem>>, %arg5: memref<128x128xbf16, #tpu.memory_space<vmem>>, %arg6: memref<1x128xf32, #tpu.memory_space<vmem>>, %arg7: memref<1x16x128xf32, #tpu.memory_space<vmem>>) attributes {dimension_semantics = [#tpu.dimension_semantics<parallel>], iteration_bounds = array<i64: 2>, scalar_prefetch = 0 : i64, scratch_operands = 0 : i64, tpu.core_type = #tpu.core_type<tc>, window_params = [{transform_indices = @transform_0, window_bounds = array<i64: 1, 16, 128>}, {pipeline_mode = #tpu.pipeline_mode<synchronous>, transform_indices = @transform_1, window_bounds = array<i64: 1, 128>}, {pipeline_mode = #tpu.pipeline_mode<synchronous>, transform_indices = @transform_2, window_bounds = array<i64: 1, 128>}, {transform_indices = @transform_3, window_bounds = array<i64: 1, 16, 128>}, {pipeline_mode = #tpu.pipeline_mode<synchronous>, transform_indices = @transform_4, window_bounds = array<i64: 128, 128>}, {pipeline_mode = #tpu.pipeline_mode<synchronous>, transform_indices = @transform_5, window_bounds = array<i64: 1, 128>}, {transform_indices = @transform_6, window_bounds = array<i64: 1, 16, 128>}]} {
    %c0 = arith.constant 0 : index
    %c0_0 = arith.constant 0 : index
    %c0_1 = arith.constant 0 : index
    %0 = vector.load %arg1[%c0, %c0_0, %c0_1] : memref<1x16x128xbf16, #tpu.memory_space<vmem>>, vector<1x16x128xbf16>
    %1 = vector.shape_cast %0 : vector<1x16x128xbf16> to vector<16x128xbf16>
    %2 = arith.extf %1 : vector<16x128xbf16> to vector<16x128xf32>
    %c0_2 = arith.constant 0 : index
    %c0_3 = arith.constant 0 : index
    %3 = vector.load %arg2[%c0_2, %c0_3] : memref<1x128xf32, #tpu.memory_space<vmem>>, vector<1x128xf32>
    %4 = vector.broadcast %3 : vector<1x128xf32> to vector<16x128xf32>
    %5 = arith.mulf %2, %4 : vector<16x128xf32>
    %c0_4 = arith.constant 0 : index
    %c0_5 = arith.constant 0 : index
    %6 = vector.load %arg3[%c0_4, %c0_5] : memref<1x128xf32, #tpu.memory_space<vmem>>, vector<1x128xf32>
    %7 = vector.broadcast %6 : vector<1x128xf32> to vector<16x128xf32>
    %8 = arith.addf %5, %7 : vector<16x128xf32>
    %c0_6 = arith.constant 0 : index
    %c0_7 = arith.constant 0 : index
    %c0_8 = arith.constant 0 : index
    %9 = vector.load %arg4[%c0_6, %c0_7, %c0_8] : memref<1x16x128xbf16, #tpu.memory_space<vmem>>, vector<1x16x128xbf16>
    %10 = vector.shape_cast %9 : vector<1x16x128xbf16> to vector<16x128xbf16>
    %11 = arith.extf %10 : vector<16x128xbf16> to vector<16x128xf32>
    %12 = arith.addf %8, %11 : vector<16x128xf32>
    %13 = arith.truncf %12 : vector<16x128xf32> to vector<16x128xbf16>
    %c0_9 = arith.constant 0 : index
    %c0_10 = arith.constant 0 : index
    %14 = vector.load %arg5[%c0_9, %c0_10] : memref<128x128xbf16, #tpu.memory_space<vmem>>, vector<128x128xbf16>
    %cst = arith.constant dense<0.000000e+00> : vector<16x128xf32>
    %15 = tpu.matmul %13, %14, %cst {dimension_numbers = #tpu.dot_dimension_numbers<[1], [0], [0], [1], [0, 0, 1, 1], [], []>} : vector<16x128xbf16>, vector<128x128xbf16>, vector<16x128xf32> -> vector<16x128xf32>
    %c0_11 = arith.constant 0 : index
    %c0_12 = arith.constant 0 : index
    %16 = vector.load %arg6[%c0_11, %c0_12] : memref<1x128xf32, #tpu.memory_space<vmem>>, vector<1x128xf32>
    %17 = vector.broadcast %16 : vector<1x128xf32> to vector<16x128xf32>
    %18 = arith.addf %15, %17 : vector<16x128xf32>
    %c0_13 = arith.constant 0 : index
    %c0_14 = arith.constant 0 : index
    %c0_15 = arith.constant 0 : index
    %19 = vector.load %arg7[%c0_13, %c0_14, %c0_15] : memref<1x16x128xf32, #tpu.memory_space<vmem>>, vector<1x16x128xf32>
    %20 = vector.shape_cast %19 : vector<1x16x128xf32> to vector<16x128xf32>
    %21 = vector.shape_cast %18 : vector<16x128xf32> to vector<1x16x128xf32>
    tpu.vector_store %arg7[%c0_13, %c0_14, %c0_15], %21 {strides = array<i32>} : memref<1x16x128xf32, #tpu.memory_space<vmem>>, vector<1x16x128xf32>,
    return
  }
  func.func @transform_0(%arg0: i32) -> (i32, i32, i32) {
    %c0_i32 = arith.constant 0 : i32
    %c0_i32_0 = arith.constant 0 : i32
    %c0_i32_1 = arith.constant 0 : i32
    return %arg0, %c0_i32, %c0_i32_0 : i32, i32, i32
  }
  func.func @transform_1(%arg0: i32) -> (i32, i32) {
    %c0_i32 = arith.constant 0 : i32
    %c0_i32_0 = arith.constant 0 : i32
    %c0_i32_1 = arith.constant 0 : i32
    return %c0_i32, %c0_i32_0 : i32, i32
  }
  func.func @transform_2(%arg0: i32) -> (i32, i32) {
    %c0_i32 = arith.constant 0 : i32
    %c0_i32_0 = arith.constant 0 : i32
    %c0_i32_1 = arith.constant 0 : i32
    return %c0_i32, %c0_i32_0 : i32, i32
  }
  func.func @transform_3(%arg0: i32) -> (i32, i32, i32) {
    %c0_i32 = arith.constant 0 : i32
    %c0_i32_0 = arith.constant 0 : i32
    %c0_i32_1 = arith.constant 0 : i32
    return %arg0, %c0_i32, %c0_i32_0 : i32, i32, i32
  }
  func.func @transform_4(%arg0: i32) -> (i32, i32) {
    %c0_i32 = arith.constant 0 : i32
    %c0_i32_0 = arith.constant 0 : i32
    %c0_i32_1 = arith.constant 0 : i32
    return %c0_i32, %c0_i32_0 : i32, i32
  }
  func.func @transform_5(%arg0: i32) -> (i32, i32) {
    %c0_i32 = arith.constant 0 : i32
    %c0_i32_0 = arith.constant 0 : i32
    %c0_i32_1 = arith.constant 0 : i32
    return %c0_i32, %c0_i32_0 : i32, i32
  }
  func.func @transform_6(%arg0: i32) -> (i32, i32, i32) {
    %c0_i32 = arith.constant 0 : i32
    %c0_i32_0 = arith.constant 0 : i32
    %c0_i32_1 = arith.constant 0 : i32
    return %arg0, %c0_i32, %c0_i32_0 : i32, i32, i32
  }
}

</mosaic_0001>

<bundles_post_ra>
// kernel: oord_encoder_forward.11
= control target key start
LH: loop header
LB: loop body
LE: loop exit
PB: predicated region body
PF: predicated region fallthrough
CT: control target
= control target key end

     0   :  { %s429_s12 = smov 0   ;;  %s459_s0 = inlined_call_operand.vmem [shape: bf16[2,64,128], index: 0, kind: input, shape index: {}]   ;;  %s460_s1 = inlined_call_operand.vmem [shape: f32[1,128], index: 1, kind: input, shape index: {}]   ;;  %s461_s2 = inlined_call_operand.vmem [shape: f32[1,128], index: 2, kind: input, shape index: {}]   ;;  %s462_s3 = inlined_call_operand.vmem [shape: bf16[2,64,128], index: 3, kind: output, shape index: {}]  }
   0x1 LB: > { %s320_s13 = sadd.s32 4294967295, %s407_s12   ;;  %p324_p0 = scmp.ge.s32.totalorder %s407_s12, 1  ;;  %s407_s12 = sphi %s429_s12, %s13_s12  }
   0x2   : > { %p137_p1 = scmp.lt.s32.totalorder %s407_s12, 3 }
   0x4   : > { %p138_p2 = pnand %p324_p0, %p137_p1 }
   0x5   : > { %p161_p3 = scmp.lt.s32.totalorder (!%p138_p2), %s320_s13, 1  ;;  %v329_v0 = vld [vmem:[%s460_s1] ss:$0 sm:$0xff] (!%p138_p2) }
   0x6   : > { %141 = sbr.rel (%p138_p2) target bundleno = 29 (0x1d), region = 32  ;;  %v330_v9 = vld [vmem:[%s461_s2] ss:$0 sm:$0xff] (!%p138_p2) }
   0xd   : > { %s464_s13 = smov (!%p161_p3, %s320_s13), 1 }
   0xe   : > { %s341_s14 = sshll.u32 %s464_s13, 5 }
   0xf   : > { %s165_s17 = scalar_lea.vmem %s459_s0, %s341_s14  ;;  %s170_s24 = scalar_lea.vmem %s462_s3, %s341_s14 }
  0x10   : > { %v352_v1 = vld [vmem:[%s165_s17] sm:$0xff]   ;;  %v387_v2 = vld [vmem:[%s165_s17 + $0x8] sm:$0xff]   ;;  %v388_v3 = vld [vmem:[%s165_s17 + $0x10] sm:$0xff]  }
  0x11   : > { %v353_v4 = vunpack.c.l.bf16 %v352_v1  ;;  %v354_v5 = vunpack.c.h.bf16 %v352_v1  ;;  %v357_v6 = vunpack.c.l.bf16 %v387_v2  ;;  %v358_v7 = vunpack.c.h.bf16 %v387_v2  ;;  %v389_v8 = vld [vmem:[%s165_s17 + $0x18] sm:$0xff]  }
  0x12   : > { %v361_v10 = vunpack.c.l.bf16 %v388_v3  ;;  %v362_v11 = vunpack.c.h.bf16 %v388_v3  ;;  %v365_v12 = vunpack.c.l.bf16 %v389_v8  ;;  %v366_v13 = vunpack.c.h.bf16 %v389_v8 }
  0x13   : > { %v194_v14 = vmul.f32 %v353_v4, %v329_v0  ;;  %v195_v15 = vmul.f32 %v354_v5, %v329_v0  ;;  %v196_v16 = vmul.f32 %v357_v6, %v329_v0  ;;  %v197_v17 = vmul.f32 %v358_v7, %v329_v0 }
  0x14   : > { %v198_v18 = vmul.f32 %v361_v10, %v329_v0  ;;  %v199_v19 = vmul.f32 %v362_v11, %v329_v0  ;;  %v200_v20 = vmul.f32 %v365_v12, %v329_v0  ;;  %v201_v21 = vmul.f32 %v366_v13, %v329_v0 }
  0x15   : > { %v209_v22 = vadd.f32 %v330_v9, %v194_v14  ;;  %v210_v23 = vadd.f32 %v330_v9, %v195_v15  ;;  %v211_v24 = vadd.f32 %v330_v9, %v196_v16  ;;  %v212_v25 = vadd.f32 %v330_v9, %v197_v17 }
  0x16   : > { %v213_v26 = vadd.f32 %v330_v9, %v198_v18  ;;  %v214_v27 = vadd.f32 %v330_v9, %v199_v19  ;;  %v215_v28 = vadd.f32 %v330_v9, %v200_v20  ;;  %v216_v29 = vadd.f32 %v330_v9, %v201_v21 }
  0x17   : > { %v217_v30 = vmax.f32 %v209_v22, 0.0  ;;  %v218_v31 = vmax.f32 %v210_v23, 0.0  ;;  %v219_v32 = vmax.f32 %v211_v24, 0.0  ;;  %v220_v33 = vmax.f32 %v212_v25, 0.0 }
  0x18   : > { %v221_v34 = vmax.f32 %v213_v26, 0.0  ;;  %v222_v35 = vmax.f32 %v214_v27, 0.0  ;;  %v223_v36 = vmax.f32 %v215_v28, 0.0  ;;  %v224_v37 = vmax.f32 %v216_v29, 0.0 }
  0x19   : > { %v370_v38 = vpack.c.bf16 %v218_v31, %v217_v30  ;;  %v375_v39 = vpack.c.bf16 %v220_v33, %v219_v32 }
  0x1a   : > { %v380_v40 = vpack.c.bf16 %v222_v35, %v221_v34  ;;  %v385_v41 = vpack.c.bf16 %v224_v37, %v223_v36 }
  0x1b   : > { %371 = vst [vmem:[%s170_s24] sm:$0xff] %v370_v38   ;;  %390 = vst [vmem:[%s170_s24 + $0x8] sm:$0xff] %v375_v39  }
  0x1c   : > { %391 = vst [vmem:[%s170_s24 + $0x10] sm:$0xff] %v380_v40   ;;  %392 = vst [vmem:[%s170_s24 + $0x18] sm:$0xff] %v385_v41  }
  0x1d PF: > { %s13_s12 = sadd.s32 1, %s407_s12  }
  0x1e   : > { %p10_p4 = scmp.ge.s32.totalorder %s13_s12, 4  }
  0x20   :  { %12 = sbr.rel (!%p10_p4) target bundleno = 1 (0x1), region = 62 }

// kernel: oord_encoder_forward.10
= control target key start
LH: loop header
LB: loop body
LE: loop exit
PB: predicated region body
PF: predicated region fallthrough
CT: control target
= control target key end

     0   :  { %s887_s18 = smov 0   ;;  %s968_s0 = inlined_call_operand.vmem [shape: bf16[2,72,64], index: 0, kind: input, shape index: {}]   ;;  %s969_s1 = inlined_call_operand.vmem [shape: bf16[128,128], index: 1, kind: input, shape index: {}]   ;;  %s970_s2 = inlined_call_operand.vmem [shape: f32[1,128], index: 2, kind: input, shape index: {}]   ;;  %s971_s3 = inlined_call_operand.vmem [shape: bf16[2,64,128], index: 3, kind: output, shape index: {0}]   ;;  %s972_s4 = inlined_call_operand.vmem [shape: f32[2,1,128], index: 4, kind: output, shape index: {1}]   ;;  %s973_s5 = inlined_call_operand.vmem [shape: f32[2,1,128], index: 5, kind: output, shape index: {2}]  }
   0x1 LB: > { %s693_s19 = sadd.s32 4294967295, %s855_s18   ;;  %p697_p0 = scmp.ge.s32.totalorder %s855_s18, 1  ;;  %s855_s18 = sphi %s887_s18, %s16_s18  }
   0x2   : > { %p192_p1 = scmp.lt.s32.totalorder %s855_s18, 3 }
   0x4   : > { %p193_p2 = pnand %p697_p0, %p192_p1 }
   0x5   : > { %v833_v0 = vld [vmem:[%s969_s1 + $0x20] sm:$0xff] (!%p193_p2)   ;;  %p226_p3 = scmp.lt.s32.totalorder (!%p193_p2), %s693_s19, 1  ;;  %v835_v2 = vld [vmem:[%s969_s1 + $0x28] sm:$0xff] (!%p193_p2)   ;;  %v837_v4 = vld [vmem:[%s969_s1 + $0x30] sm:$0xff] (!%p193_p2)   ;;  %vm312_vm0 = vcmask (!%p193_p2), 523264  }
   0x6   : > { %196 = sbr.rel (%p193_p2) target bundleno = 272 (0x110), region = 32  ;;  %v834_v1 = vld [vmem:[%s969_s1] sm:$0xff] (!%p193_p2)   ;;  %784 = vmatprep.subr.bf16.mxu1 (!%p193_p2), %v833_v0  ;;  %v836_v3 = vld [vmem:[%s969_s1 + $0x8] sm:$0xff] (!%p193_p2)   ;;  %v838_v5 = vld [vmem:[%s969_s1 + $0x10] sm:$0xff] (!%p193_p2)  }
   0x7   : > { %800 = vmatprep.subr.bf16.mxu0 (!%p193_p2), %v834_v1  ;;  %785 = vmatpush3.bf16.msra.mxu1 (!%p193_p2), %v833_v0  ;;  %v839_v6 = vld [vmem:[%s969_s1 + $0x38] sm:$0xff] (!%p193_p2)   ;;  %v725_v29 = vld [vmem:[%s970_s2] ss:$0 sm:$0xff] (!%p193_p2) }
   0x8   : > { %801 = vmatpush3.bf16.msra.mxu0 (!%p193_p2), %v834_v1  ;;  %786 = vmatprep.subr.bf16.mxu1 (!%p193_p2), %v835_v2  ;;  %v840_v9 = vld [vmem:[%s969_s1 + $0x18] sm:$0xff] (!%p193_p2)  }
   0x9   : > { %802 = vmatprep.subr.bf16.mxu0 (!%p193_p2), %v836_v3 }
   0xb   : > { %787 = vmatpush3.bf16.msra.mxu1 (!%p193_p2), %v835_v2 }
   0xc   : > { %803 = vmatpush3.bf16.msra.mxu0 (!%p193_p2), %v836_v3  ;;  %788 = vmatprep.subr.bf16.mxu1 (!%p193_p2), %v837_v4 }
   0xd   : > { %s975_s19 = smov (!%p226_p3, %s693_s19), 1  ;;  %804 = vmatprep.subr.bf16.mxu0 %v838_v5 }
   0xe   : > { %s824_s30 = smul.u32 36, %s975_s19  ;;  %s736_s17 = sshll.u32 %s975_s19, 5 }
   0xf   : > { %789 = vmatpush3.bf16.msra.mxu1 %v837_v4  ;;  %s951_s22 = scalar_lea.vmem %s971_s3, %s736_s17  ;;  %s238_s25 = scalar_lea.vmem %s972_s4, %s975_s19 }
  0x10   : > { %s919_s10 = scalar_lea.vmem %s968_s0, %s824_s30  ;;  %805 = vmatpush3.bf16.msra.mxu0 %v838_v5  ;;  %790 = vmatprep.subr.bf16.mxu1 %v839_v6  ;;  %s241_s28 = scalar_lea.vmem %s973_s5, %s975_s19 }
  0x11   : > { %v244_v7 = vld [vmem:[%s919_s10 + $0x4] sm:$0xf]  ;;  %v245_v8 = vld [vmem:[%s919_s10 + $0x8] sm:$0xf]  ;;  %v243_v11 = vld [vmem:[%s919_s10] sm:$0xf]  ;;  %806 = vmatprep.subr.bf16.mxu0 %v840_v9 }
  0x12   : > { %v701_v10 = vcombine.low %v244_v7, %v245_v8  ;;  %v713_v12 = vcombine.low %v243_v11, %v244_v7  ;;  %v246_v13 = vld [vmem:[%s919_s10 + $0xc] sm:$0xf]  ;;  %v247_v14 = vld [vmem:[%s919_s10 + $0x10] sm:$0xf]  ;;  %v248_v15 = vld [vmem:[%s919_s10 + $0x14] sm:$0xf] }
  0x13   : > { %v249_v16 = vld [vmem:[%s919_s10 + $0x18] sm:$0xf]  ;;  %v702_v17 = vcombine.low %v246_v13, %v247_v14  ;;  %791 = vmatpush3.bf16.msra.mxu1 %v839_v6  ;;  %v714_v18 = vcombine.low %v245_v8, %v246_v13  ;;  %v715_v20 = vcombine.low %v247_v14, %v248_v15  ;;  %v250_v21 = vld [vmem:[%s919_s10 + $0x1c] sm:$0xf]  ;;  %v251_v22 = vld [vmem:[%s919_s10 + $0x20] sm:$0xf] }
  0x14   : > { %792 = vmatprep.mubr.msk.bf16.mxu1 %vm312_vm0, %v701_v10  ;;  %808 = vmatprep.mubr.msk.bf16.mxu0 %vm312_vm0, %v713_v12  ;;  %v703_v19 = vcombine.low %v248_v15, %v249_v16  ;;  %v704_v23 = vcombine.low %v250_v21, %v251_v22  ;;  %v716_v24 = vcombine.low %v249_v16, %v250_v21 }
  0x15   : > { %807 = vmatpush3.bf16.msra.mxu0 %v840_v9 }
  0x16   : > { %793 = vmatmul.mubr.msk.bf16.vlgmr.msra.gmra.mrb[0].mxu1 %vm312_vm0, %v702_v17 }
  0x17   : > { %796 = vmatprep.mubr.msk.bf16.mxu1 %vm312_vm0, %v703_v19 }
  0x18   : > { %809 = vmatmul.mubr.msk.bf16.vlgmr.msra.gmra.mrb[0].mxu0 %vm312_vm0, %v714_v18 }
  0x19   : > { %812 = vmatprep.mubr.msk.bf16.mxu0 %vm312_vm0, %v715_v20 }
  0x1e   : > { %797 = vmatmul.mubr.msk.bf16.gmra.mrb[4].mxu1 %vm312_vm0, %v704_v23 }
  0x20   : > { %813 = vmatmul.mubr.msk.bf16.gmra.mrb[4].mxu0 %vm312_vm0, %v716_v24 }
  0xe9   : > { %v794_v25 = vpop.f32.mrb[0].mxu1 }
  0xea   : > { %v359_v27 = vpop.f32.mrb[1].mxu1 }
  0xeb   : > { %v810_v26 = vpop.f32.mrb[0].mxu0  ;;  %v795_v31 = vpop.f32.mrb[2].mxu1 }
  0xec   : > { %v475_v28 = vadd.f32 %v810_v26, %v794_v25  ;;  %v466_v30 = vpop.f32.mrb[1].mxu0  ;;  %v362_v34 = vpop.f32.mrb[3].mxu1 }
  0xed   : > { %v467_v32 = vadd.f32 %v466_v30, %v359_v27  ;;  %v811_v33 = vpop.f32.mrb[2].mxu0 }
  0xee   : > { %v478_v35 = vadd.f32 %v811_v33, %v795_v31  ;;  %v469_v36 = vpop.f32.mrb[3].mxu0  ;;  %v506_v39 = vadd.f32 %v725_v29, %v475_v28 }
  0xef   : > { %v504_v37 = vadd.f32 %v725_v29, %v467_v32  ;;  %v470_v38 = vadd.f32 %v469_v36, %v362_v34 }
  0xf0   : > { %v507_v40 = vadd.f32 %v725_v29, %v478_v35  ;;  %v568_v53 = vmul.f32 %v506_v39, %v506_v39 }
  0xf1   : > { %v505_v41 = vadd.f32 %v725_v29, %v470_v38  ;;  %v798_v43 = vpop.f32.mrb[4].mxu1  ;;  %v566_v44 = vmul.f32 %v504_v37, %v504_v37 }
  0xf2   : > { %v753_v42 = vpack.c.bf16 %v507_v40, %v506_v39  ;;  %v375_v49 = vpop.f32.mrb[5].mxu1  ;;  %v569_v59 = vmul.f32 %v507_v40, %v507_v40 }
  0xf3   : > { %v748_v45 = vpack.c.bf16 %v505_v41, %v504_v37  ;;  %v552_v46 = vadd.f32 %v505_v41, %v504_v37  ;;  %v567_v47 = vmul.f32 %v505_v41, %v505_v41  ;;  %v814_v48 = vpop.f32.mrb[4].mxu0  ;;  %v799_v52 = vpop.f32.mrb[6].mxu1 }
  0xf4   : > { %765 = vst [vmem:[%s951_s22 + $0x8] sm:$0xff] %v753_v42   ;;  %v491_v50 = vadd.f32 %v814_v48, %v798_v43  ;;  %v482_v51 = vpop.f32.mrb[5].mxu0  ;;  %v378_v58 = vpop.f32.mrb[7].mxu1 }
  0xf5   : > { %749 = vst [vmem:[%s951_s22] sm:$0xff] %v748_v45   ;;  %v553_v54 = vadd.f32 %v552_v46, %v506_v39  ;;  %v574_v55 = vadd.f32 %v567_v47, %v566_v44  ;;  %v483_v56 = vadd.f32 %v482_v51, %v375_v49  ;;  %v815_v57 = vpop.f32.mrb[6].mxu0 }
  0xf6   : > { %v494_v60 = vadd.f32 %v815_v57, %v799_v52  ;;  %v485_v61 = vpop.f32.mrb[7].mxu0  ;;  %v510_v2 = vadd.f32 %v725_v29, %v491_v50 }
  0xf7   : > { %v575_v62 = vadd.f32 %v574_v55, %v568_v53  ;;  %v508_v63 = vadd.f32 %v725_v29, %v483_v56  ;;  %v554_v0 = vadd.f32 %v553_v54, %v507_v40  ;;  %v486_v1 = vadd.f32 %v485_v61, %v378_v58 }
  0xf8   : > { %v511_v3 = vadd.f32 %v725_v29, %v494_v60  ;;  %v572_v13 = vmul.f32 %v510_v2, %v510_v2 }
  0xf9   : > { %v555_v4 = vadd.f32 %v554_v0, %v508_v63  ;;  %v570_v5 = vmul.f32 %v508_v63, %v508_v63  ;;  %v576_v6 = vadd.f32 %v575_v62, %v569_v59  ;;  %v509_v7 = vadd.f32 %v725_v29, %v486_v1 }
  0xfa   : > { %v763_v8 = vpack.c.bf16 %v511_v3, %v510_v2  ;;  %v573_v16 = vmul.f32 %v511_v3, %v511_v3 }
  0xfb   : > { %v577_v9 = vadd.f32 %v576_v6, %v570_v5  ;;  %v758_v10 = vpack.c.bf16 %v509_v7, %v508_v63  ;;  %v556_v11 = vadd.f32 %v555_v4, %v509_v7  ;;  %v571_v12 = vmul.f32 %v509_v7, %v509_v7 }
  0xfc   : > { %767 = vst [vmem:[%s951_s22 + $0x18] sm:$0xff] %v763_v8  }
  0xfd   : > { %766 = vst [vmem:[%s951_s22 + $0x10] sm:$0xff] %v758_v10   ;;  %v557_v14 = vadd.f32 %v556_v11, %v510_v2  ;;  %v578_v15 = vadd.f32 %v577_v9, %v571_v12 }
  0xff   : > { %v558_v17 = vadd.f32 %v557_v14, %v511_v3  ;;  %v579_v18 = vadd.f32 %v578_v15, %v572_v13 }
 0x101   : > { %v559_v19 = vrot.slane %v558_v17, 4  ;;  %v580_v20 = vadd.f32 %v579_v18, %v573_v16 }
 0x103   : > { %v560_v21 = vadd.f32 %v559_v19, %v558_v17  ;;  %v581_v22 = vrot.slane %v580_v20, 4 }
 0x105   : > { %v561_v23 = vrot.slane %v560_v21, 2  ;;  %v582_v24 = vadd.f32 %v581_v22, %v580_v20 }
 0x107   : > { %v562_v25 = vadd.f32 %v561_v23, %v560_v21  ;;  %v583_v26 = vrot.slane %v582_v24, 2 }
 0x109   : > { %v563_v27 = vrot.slane %v562_v25, 1  ;;  %v584_v28 = vadd.f32 %v583_v26, %v582_v24 }
 0x10b   : > { %v564_v29 = vadd.f32 %v563_v27, %v562_v25  ;;  %v585_v30 = vrot.slane %v584_v28, 1 }
 0x10d   : > { %565 = vst [vmem:[%s238_s25] sm:$0x1] %v564_v29  ;;  %v586_v31 = vadd.f32 %v585_v30, %v584_v28 }
 0x10f   : > { %587 = vst [vmem:[%s241_s28] sm:$0x1] %v586_v31 }
 0x110 PF: > { %s16_s18 = sadd.s32 1, %s855_s18  }
 0x111   : > { %p13_p4 = scmp.ge.s32.totalorder %s16_s18, 4  }
 0x113   :  { %15 = sbr.rel (!%p13_p4) target bundleno = 1 (0x1), region = 86 }

// kernel: oord_encoder_forward.13
= control target key start
LH: loop header
LB: loop body
LE: loop exit
PB: predicated region body
PF: predicated region fallthrough
CT: control target
= control target key end

     0   :  { %s298_s12 = smov 0   ;;  %s334_s0 = inlined_call_operand.vmem [shape: bf16[2,16,128], index: 0, kind: input, shape index: {}]   ;;  %s335_s1 = inlined_call_operand.vmem [shape: f32[1,128], index: 1, kind: input, shape index: {}]   ;;  %s336_s2 = inlined_call_operand.vmem [shape: f32[1,128], index: 2, kind: input, shape index: {}]   ;;  %s337_s3 = inlined_call_operand.vmem [shape: bf16[2,16,128], index: 3, kind: output, shape index: {}]  }
   0x1 LB: > { %s258_s13 = sadd.s32 4294967295, %s300_s12   ;;  %p262_p0 = scmp.ge.s32.totalorder %s300_s12, 1  ;;  %s300_s12 = sphi %s298_s12, %s13_s12  }
   0x2   : > { %p137_p1 = scmp.lt.s32.totalorder %s300_s12, 3 }
   0x4   : > { %p138_p2 = pnand %p262_p0, %p137_p1 }
   0x5   : > { %p161_p3 = scmp.lt.s32.totalorder (!%p138_p2), %s258_s13, 1  ;;  %v267_v1 = vld [vmem:[%s335_s1] ss:$0 sm:$0xff] (!%p138_p2) }
   0x6   : > { %141 = sbr.rel (%p138_p2) target bundleno = 26 (0x1a), region = 32  ;;  %v268_v4 = vld [vmem:[%s336_s2] ss:$0 sm:$0xff] (!%p138_p2) }
   0xd   : > { %s339_s13 = smov (!%p161_p3, %s258_s13), 1 }
   0xe   : > { %s273_s14 = sshll.u32 %s339_s13, 3 }
   0xf   : > { %s165_s17 = scalar_lea.vmem %s334_s0, %s273_s14  ;;  %s170_s24 = scalar_lea.vmem %s337_s3, %s273_s14 }
  0x10   : > { %v278_v0 = vld [vmem:[%s165_s17] sm:$0xff]  }
  0x11   : > { %v279_v2 = vunpack.c.l.bf16 %v278_v0  ;;  %v280_v3 = vunpack.c.h.bf16 %v278_v0 }
  0x13   : > { %v182_v5 = vmul.f32 %v279_v2, %v267_v1  ;;  %v183_v6 = vmul.f32 %v280_v3, %v267_v1 }
  0x15   : > { %v191_v7 = vadd.f32 %v268_v4, %v182_v5  ;;  %v192_v8 = vadd.f32 %v268_v4, %v183_v6 }
  0x17   : > { %v284_v9 = vpack.c.bf16 %v192_v8, %v191_v7 }
  0x19   : > { %285 = vst [vmem:[%s170_s24] sm:$0xff] %v284_v9  }
  0x1a PF: > { %s13_s12 = sadd.s32 1, %s300_s12  }
  0x1b   : > { %p10_p4 = scmp.ge.s32.totalorder %s13_s12, 4  }
  0x1d   :  { %12 = sbr.rel (!%p10_p4) target bundleno = 1 (0x1), region = 62 }

// kernel: oord_encoder_forward.16
= control target key start
LH: loop header
LB: loop body
LE: loop exit
PB: predicated region body
PF: predicated region fallthrough
CT: control target
= control target key end

     0   :  { %s399_s15 = smov 0   ;;  %s425_s0 = inlined_call_operand.vmem [shape: bf16[2,16,128], index: 0, kind: input, shape index: {}]   ;;  %s426_s1 = inlined_call_operand.vmem [shape: f32[1,128], index: 1, kind: input, shape index: {}]   ;;  %s427_s2 = inlined_call_operand.vmem [shape: f32[1,128], index: 2, kind: input, shape index: {}]   ;;  %s428_s3 = inlined_call_operand.vmem [shape: bf16[2,16,128], index: 3, kind: input, shape index: {}]   ;;  %s429_s4 = inlined_call_operand.vmem [shape: bf16[2,16,128], index: 4, kind: output, shape index: {}]  }
   0x1 LB: > { %s323_s16 = sadd.s32 4294967295, %s372_s15   ;;  %p327_p0 = scmp.ge.s32.totalorder %s372_s15, 1  ;;  %s372_s15 = sphi %s399_s15, %s14_s15  }
   0x2   : > { %p172_p1 = scmp.lt.s32.totalorder %s372_s15, 3 }
   0x4   : > { %p173_p2 = pnand %p327_p0, %p172_p1 }
   0x5   : > { %p203_p3 = scmp.lt.s32.totalorder (!%p173_p2), %s323_s16, 1  ;;  %v334_v1 = vld [vmem:[%s426_s1] ss:$0 sm:$0xff] (!%p173_p2) }
   0x6   : > { %176 = sbr.rel (%p173_p2) target bundleno = 28 (0x1c), region = 36  ;;  %v335_v5 = vld [vmem:[%s427_s2] ss:$0 sm:$0xff] (!%p173_p2) }
   0xd   : > { %s431_s16 = smov (!%p203_p3, %s323_s16), 1 }
   0xe   : > { %s340_s17 = sshll.u32 %s431_s16, 3 }
   0xf   : > { %s207_s20 = scalar_lea.vmem %s425_s0, %s340_s17  ;;  %s212_s23 = scalar_lea.vmem %s428_s3, %s340_s17 }
  0x10   : > { %v346_v0 = vld [vmem:[%s207_s20] sm:$0xff]   ;;  %s217_s30 = scalar_lea.vmem %s429_s4, %s340_s17 }
  0x11   : > { %v350_v2 = vld [vmem:[%s212_s23] sm:$0xff]   ;;  %v347_v3 = vunpack.c.l.bf16 %v346_v0  ;;  %v348_v4 = vunpack.c.h.bf16 %v346_v0 }
  0x12   : > { %v351_v8 = vunpack.c.l.bf16 %v350_v2  ;;  %v352_v9 = vunpack.c.h.bf16 %v350_v2 }
  0x13   : > { %v229_v6 = vmul.f32 %v347_v3, %v334_v1  ;;  %v230_v7 = vmul.f32 %v348_v4, %v334_v1 }
  0x15   : > { %v238_v10 = vadd.f32 %v335_v5, %v229_v6  ;;  %v239_v11 = vadd.f32 %v335_v5, %v230_v7 }
  0x17   : > { %v244_v12 = vadd.f32 %v351_v8, %v238_v10  ;;  %v245_v13 = vadd.f32 %v352_v9, %v239_v11 }
  0x19   : > { %v356_v14 = vpack.c.bf16 %v245_v13, %v244_v12 }
  0x1b   : > { %357 = vst [vmem:[%s217_s30] sm:$0xff] %v356_v14  }
  0x1c PF: > { %s14_s15 = sadd.s32 1, %s372_s15  }
  0x1d   : > { %p11_p4 = scmp.ge.s32.totalorder %s14_s15, 4  }
  0x1f   :  { %13 = sbr.rel (!%p11_p4) target bundleno = 1 (0x1), region = 69 }

// kernel: oord_encoder_forward.12
= control target key start
LH: loop header
LB: loop body
LE: loop exit
PB: predicated region body
PF: predicated region fallthrough
CT: control target
= control target key end

     0   :  { %s2366_s18 = smov 0   ;;  %s2840_s0 = inlined_call_operand.vmem [shape: bf16[2,20,1024], index: 0, kind: input, shape index: {}]   ;;  %s2841_s1 = inlined_call_operand.vmem [shape: bf16[2048,128], index: 1, kind: input, shape index: {}]   ;;  %s2842_s2 = inlined_call_operand.vmem [shape: f32[1,128], index: 2, kind: input, shape index: {}]   ;;  %s2843_s3 = inlined_call_operand.vmem [shape: bf16[2,16,128], index: 3, kind: output, shape index: {0}]   ;;  %s2844_s4 = inlined_call_operand.vmem [shape: f32[2,1,128], index: 4, kind: output, shape index: {1}]   ;;  %s2845_s5 = inlined_call_operand.vmem [shape: f32[2,1,128], index: 5, kind: output, shape index: {2}]  }
   0x1 LB: > { %s1842_s19 = sadd.s32 4294967295, %s2334_s18   ;;  %p1846_p0 = scmp.ge.s32.totalorder %s2334_s18, 1  ;;  %s2334_s18 = sphi %s2366_s18, %s16_s18  }
   0x2   : > { %p192_p1 = scmp.lt.s32.totalorder %s2334_s18, 3 }
   0x4   : > { %p193_p2 = pnand %p1846_p0, %p192_p1 }
   0x5   : > { %v2192_v0 = vld [vmem:[%s2841_s1 + $0x240] sm:$0xff] (!%p193_p2)   ;;  %v2196_v4 = vld [vmem:[%s2841_s1 + $0x248] sm:$0xff] (!%p193_p2)   ;;  %v2200_v8 = vld [vmem:[%s2841_s1 + $0x250] sm:$0xff] (!%p193_p2)   ;;  %p226_p3 = scmp.lt.s32.totalorder (!%p193_p2), %s1842_s19, 1  ;;  %vm563_vm0 = vcmask (!%p193_p2), 1045504  }
   0x6   : > { %196 = sbr.rel (%p193_p2) target bundleno = 375 (0x177), region = 32  ;;  %v2193_v1 = vld [vmem:[%s2841_s1 + $0x2c0] sm:$0xff] (!%p193_p2)   ;;  %2007 = vmatprep.subr.bf16.mxu0 (!%p193_p2), %v2192_v0  ;;  %v2197_v5 = vld [vmem:[%s2841_s1 + $0x2c8] sm:$0xff] (!%p193_p2)   ;;  %v2201_v9 = vld [vmem:[%s2841_s1 + $0x2d0] sm:$0xff] (!%p193_p2)  }
   0x7   : > { %v2194_v2 = vld [vmem:[%s2841_s1 + $0x200] sm:$0xff] (!%p193_p2)   ;;  %2029 = vmatprep.subr.bf16.mxu1 (!%p193_p2), %v2193_v1  ;;  %v2198_v6 = vld [vmem:[%s2841_s1 + $0x208] sm:$0xff] (!%p193_p2)   ;;  %v2202_v10 = vld [vmem:[%s2841_s1 + $0x210] sm:$0xff] (!%p193_p2)  }
   0x8   : > { %v2195_v3 = vld [vmem:[%s2841_s1 + $0x280] sm:$0xff] (!%p193_p2)   ;;  %2008 = vmatpush3.bf16.msra.mxu0 (!%p193_p2), %v2194_v2  ;;  %v2199_v7 = vld [vmem:[%s2841_s1 + $0x288] sm:$0xff] (!%p193_p2)   ;;  %v2203_v11 = vld [vmem:[%s2841_s1 + $0x290] sm:$0xff] (!%p193_p2)  }
   0x9   : > { %2030 = vmatpush3.bf16.msra.mxu1 (!%p193_p2), %v2195_v3  ;;  %2009 = vmatprep.subr.bf16.mxu0 (!%p193_p2), %v2196_v4  ;;  %v2204_v12 = vld [vmem:[%s2841_s1 + $0x258] sm:$0xff] (!%p193_p2)   ;;  %v2208_v16 = vld [vmem:[%s2841_s1 + $0x260] sm:$0xff] (!%p193_p2)   ;;  %v2212_v20 = vld [vmem:[%s2841_s1 + $0x268] sm:$0xff] (!%p193_p2)  }
   0xa   : > { %2031 = vmatprep.subr.bf16.mxu1 (!%p193_p2), %v2197_v5  ;;  %v2205_v13 = vld [vmem:[%s2841_s1 + $0x2d8] sm:$0xff] (!%p193_p2)   ;;  %v2209_v17 = vld [vmem:[%s2841_s1 + $0x2e0] sm:$0xff] (!%p193_p2)   ;;  %v2213_v21 = vld [vmem:[%s2841_s1 + $0x2e8] sm:$0xff] (!%p193_p2)  }
   0xb   : > { %v2206_v14 = vld [vmem:[%s2841_s1 + $0x218] sm:$0xff] (!%p193_p2)   ;;  %v2210_v18 = vld [vmem:[%s2841_s1 + $0x220] sm:$0xff] (!%p193_p2)   ;;  %v2214_v22 = vld [vmem:[%s2841_s1 + $0x228] sm:$0xff] (!%p193_p2)  }
   0xc   : > { %2010 = vmatpush3.bf16.msra.mxu0 (!%p193_p2), %v2198_v6  ;;  %v2207_v15 = vld [vmem:[%s2841_s1 + $0x298] sm:$0xff] (!%p193_p2)   ;;  %v2211_v19 = vld [vmem:[%s2841_s1 + $0x2a0] sm:$0xff] (!%p193_p2)   ;;  %v2215_v23 = vld [vmem:[%s2841_s1 + $0x2a8] sm:$0xff] (!%p193_p2)  }
   0xd   : > { %2032 = vmatpush3.bf16.msra.mxu1 %v2199_v7  ;;  %2011 = vmatprep.subr.bf16.mxu0 %v2200_v8  ;;  %s2847_s19 = smov (!%p226_p3, %s1842_s19), 1  ;;  %v2216_v24 = vld [vmem:[%s2841_s1 + $0x270] sm:$0xff]   ;;  %v2220_v28 = vld [vmem:[%s2841_s1 + $0x278] sm:$0xff]   ;;  %v2228_v46 = vld [vmem:[%s2841_s1 + $0x340] sm:$0xff]  }
   0xe   : > { %2033 = vmatprep.subr.bf16.mxu1 %v2201_v9  ;;  %v2217_v25 = vld [vmem:[%s2841_s1 + $0x2f0] sm:$0xff]   ;;  %s2183_s26 = smul.u32 96, %s2847_s19  ;;  %v2221_v29 = vld [vmem:[%s2841_s1 + $0x2f8] sm:$0xff]   ;;  %v2229_v57 = vld [vmem:[%s2841_s1 + $0x3c0] sm:$0xff]   ;;  %s1999_s6 = sshll.u32 %s2847_s19, 3 }
   0xf   : > { %v2218_v26 = vld [vmem:[%s2841_s1 + $0x230] sm:$0xff]   ;;  %v2222_v30 = vld [vmem:[%s2841_s1 + $0x238] sm:$0xff]   ;;  %v2230_v60 = vld [vmem:[%s2841_s1 + $0x300] sm:$0xff]   ;;  %s235_s9 = scalar_lea.vmem %s2843_s3, %s1999_s6  ;;  %s238_s13 = scalar_lea.vmem %s2844_s4, %s2847_s19 }
  0x10   : > { %2012 = vmatpush3.bf16.msra.mxu0 %v2202_v10  ;;  %v2219_v27 = vld [vmem:[%s2841_s1 + $0x2b0] sm:$0xff]   ;;  %s2474_s12 = scalar_lea.vmem %s2840_s0, %s2183_s26  ;;  %v2223_v31 = vld [vmem:[%s2841_s1 + $0x2b8] sm:$0xff]   ;;  %v2231_v61 = vld [vmem:[%s2841_s1 + $0x380] sm:$0xff]   ;;  %s241_s16 = scalar_lea.vmem %s2845_s5, %s2847_s19 }
  0x11   : > { %2034 = vmatpush3.bf16.msra.mxu1 %v2203_v11  ;;  %2013 = vmatprep.subr.bf16.mxu0 %v2204_v12  ;;  %v243_v32 = vld [vmem:[%s2474_s12] sm:$0xff]  ;;  %v244_v37 = vld [vmem:[%s2474_s12 + $0x8] sm:$0xff]  ;;  %v2236_v2 = vld [vmem:[%s2841_s1 + $0x350] sm:$0xff]  }
  0x12   : > { %2035 = vmatprep.subr.bf16.mxu1 %v2205_v13  ;;  %v247_v33 = vld [vmem:[%s2474_s12 + $0x20] sm:$0xff]  ;;  %v248_v38 = vld [vmem:[%s2474_s12 + $0x28] sm:$0xff]  ;;  %v2237_v3 = vld [vmem:[%s2841_s1 + $0x3d0] sm:$0xff]  }
  0x13   : > { %v251_v34 = vld [vmem:[%s2474_s12 + $0x40] sm:$0x33]  ;;  %v2485_v35 = vcombine.high %v243_v32, %v247_v33  ;;  %v252_v39 = vld [vmem:[%s2474_s12 + $0x48] sm:$0x33]  ;;  %v2490_v40 = vcombine.low %v243_v32, %v247_v33  ;;  %v2492_v42 = vcombine.high %v244_v37, %v248_v38  ;;  %v2494_v44 = vcombine.low %v244_v37, %v248_v38  ;;  %v2238_v4 = vld [vmem:[%s2841_s1 + $0x310] sm:$0xff]  }
  0x14   : > { %2014 = vmatpush3.bf16.msra.mxu0 %v2206_v14  ;;  %v1859_v36 = vcombine.high %v251_v34, %v251_v34  ;;  %v1858_v41 = vcombine.low %v251_v34, %v251_v34  ;;  %v1861_v43 = vcombine.high %v252_v39, %v252_v39  ;;  %v1860_v45 = vcombine.low %v252_v39, %v252_v39  ;;  %v2232_v62 = vld [vmem:[%s2841_s1 + $0x348] sm:$0xff]   ;;  %v2239_v5 = vld [vmem:[%s2841_s1 + $0x390] sm:$0xff]   ;;  %v2240_v6 = vld [vmem:[%s2841_s1 + $0x358] sm:$0xff]  }
  0x15   : > { %2036 = vmatpush3.bf16.msra.mxu1 %v2207_v15  ;;  %2015 = vmatprep.subr.bf16.mxu0 %v2208_v16  ;;  %v567_v47 = vrot.slane %v2485_v35, 2  ;;  %v564_v49 = vrot.slane %v2490_v40, 2  ;;  %v573_v51 = vrot.slane %v2492_v42, 2  ;;  %v570_v53 = vrot.slane %v2494_v44, 2  ;;  %v2233_v63 = vld [vmem:[%s2841_s1 + $0x3c8] sm:$0xff]   ;;  %v2241_v7 = vld [vmem:[%s2841_s1 + $0x3d8] sm:$0xff]  }
  0x16   : > { %2037 = vmatprep.subr.bf16.mxu1 %v2209_v17  ;;  %v568_v48 = vrot.slane %v1859_v36, 2  ;;  %v565_v50 = vrot.slane %v1858_v41, 2  ;;  %v574_v52 = vrot.slane %v1861_v43, 2  ;;  %v571_v54 = vrot.slane %v1860_v45, 2  ;;  %v2234_v0 = vld [vmem:[%s2841_s1 + $0x308] sm:$0xff]   ;;  %v2242_v8 = vld [vmem:[%s2841_s1 + $0x318] sm:$0xff]  }
  0x17   : > { %v2235_v1 = vld [vmem:[%s2841_s1 + $0x388] sm:$0xff]   ;;  %v2243_v9 = vld [vmem:[%s2841_s1 + $0x398] sm:$0xff]   ;;  %v2244_v10 = vld [vmem:[%s2841_s1 + $0x360] sm:$0xff]  }
  0x18   : > { %2016 = vmatpush3.bf16.msra.mxu0 %v2210_v18  ;;  %v569_v55 = vsel %vm563_vm0, %v567_v47, %v568_v48  ;;  %v566_v56 = vsel %vm563_vm0, %v564_v49, %v565_v50  ;;  %v575_v58 = vsel %vm563_vm0, %v573_v51, %v574_v52  ;;  %v572_v59 = vsel %vm563_vm0, %v570_v53, %v571_v54  ;;  %v2245_v11 = vld [vmem:[%s2841_s1 + $0x3e0] sm:$0xff]   ;;  %v2248_v14 = vld [vmem:[%s2841_s1 + $0x368] sm:$0xff]   ;;  %v2252_v18 = vld [vmem:[%s2841_s1 + $0x370] sm:$0xff]  }
  0x19   : > { %2038 = vmatpush3.bf16.msra.mxu1 %v2211_v19  ;;  %2017 = vmatprep.subr.bf16.mxu0 %v2212_v20  ;;  %v2246_v12 = vld [vmem:[%s2841_s1 + $0x320] sm:$0xff]   ;;  %v2249_v15 = vld [vmem:[%s2841_s1 + $0x3e8] sm:$0xff]   ;;  %v2253_v19 = vld [vmem:[%s2841_s1 + $0x3f0] sm:$0xff]  }
  0x1a   : > { %2039 = vmatprep.subr.bf16.mxu1 %v2213_v21  ;;  %1012 = vmatprep.mubr.bf16.mxu0 %v569_v55  ;;  %v2247_v13 = vld [vmem:[%s2841_s1 + $0x3a0] sm:$0xff]   ;;  %v2250_v16 = vld [vmem:[%s2841_s1 + $0x328] sm:$0xff]   ;;  %v2254_v20 = vld [vmem:[%s2841_s1 + $0x330] sm:$0xff]  }
  0x1b   : > { %1053 = vmatprep.mubr.bf16.mxu1 %v575_v58  ;;  %v2251_v17 = vld [vmem:[%s2841_s1 + $0x3a8] sm:$0xff]   ;;  %v2255_v21 = vld [vmem:[%s2841_s1 + $0x3b0] sm:$0xff]   ;;  %v254_v34 = vld [vmem:[%s2474_s12 + $0x58] sm:$0x33] }
  0x1c   : > { %2018 = vmatpush3.bf16.msra.mxu0 %v2214_v22  ;;  %v2256_v22 = vld [vmem:[%s2841_s1 + $0x378] sm:$0xff]   ;;  %v1865_v39 = vcombine.high %v254_v34, %v254_v34  ;;  %v2264_v45 = vld [vmem:[%s2841_s1 + $0x40] sm:$0xff]   ;;  %v1864_v50 = vcombine.low %v254_v34, %v254_v34 }
  0x1d   : > { %2040 = vmatpush3.bf16.msra.mxu1 %v2215_v23  ;;  %2019 = vmatprep.subr.bf16.mxu0 %v2216_v24  ;;  %v2257_v23 = vld [vmem:[%s2841_s1 + $0x3f8] sm:$0xff]   ;;  %v2266_v51 = vld [vmem:[%s2841_s1] sm:$0xff]  }
  0x1e   : > { %2041 = vmatprep.subr.bf16.mxu1 %v2217_v25  ;;  %v2258_v24 = vld [vmem:[%s2841_s1 + $0x338] sm:$0xff]   ;;  %v586_v52 = vrot.slane %v1865_v39, 2  ;;  %v2313_v39 = vld [vmem:[%s2841_s1 + $0x1e0] sm:$0xff]  }
  0x1f   : > { %v2259_v25 = vld [vmem:[%s2841_s1 + $0x3b8] sm:$0xff]  }
  0x20   : > { %2020 = vmatpush3.bf16.msra.mxu0 %v2218_v26  ;;  %v245_v26 = vld [vmem:[%s2474_s12 + $0x10] sm:$0xff]  ;;  %v2309_v34 = vld [vmem:[%s2841_s1 + $0x1d8] sm:$0xff]  }
  0x21   : > { %2042 = vmatpush3.bf16.msra.mxu1 %v2219_v27  ;;  %2021 = vmatprep.subr.bf16.mxu0 %v2220_v28  ;;  %v249_v27 = vld [vmem:[%s2474_s12 + $0x30] sm:$0xff] }
  0x22   : > { %2043 = vmatprep.subr.bf16.mxu1 %v2221_v29  ;;  %v253_v28 = vld [vmem:[%s2474_s12 + $0x50] sm:$0x33]  ;;  %v2603_v29 = vcombine.high %v245_v26, %v249_v27  ;;  %v2607_v32 = vcombine.low %v245_v26, %v249_v27  ;;  %v2300_v26 = vld [vmem:[%s2841_s1 + $0x148] sm:$0xff]  }
  0x23   : > { %v1863_v33 = vcombine.high %v253_v28, %v253_v28  ;;  %v1862_v37 = vcombine.low %v253_v28, %v253_v28  ;;  %v2301_v27 = vld [vmem:[%s2841_s1 + $0x1c8] sm:$0xff]  }
  0x24   : > { %2022 = vmatpush3.bf16.msra.mxu0 %v2222_v30  ;;  %v246_v30 = vld [vmem:[%s2474_s12 + $0x18] sm:$0xff]  ;;  %v579_v38 = vrot.slane %v2603_v29, 2  ;;  %v576_v41 = vrot.slane %v2607_v32, 2  ;;  %v2302_v28 = vld [vmem:[%s2841_s1 + $0x108] sm:$0xff]  }
  0x25   : > { %2044 = vmatpush3.bf16.msra.mxu1 %v2223_v31  ;;  %2051 = vmatprep.subr.bf16.mxu0 %v2228_v46  ;;  %v250_v31 = vld [vmem:[%s2474_s12 + $0x38] sm:$0xff]  ;;  %v2265_v46 = vld [vmem:[%s2841_s1 + $0xc0] sm:$0xff]   ;;  %v580_v47 = vrot.slane %v1863_v33, 2  ;;  %v577_v49 = vrot.slane %v1862_v37, 2  ;;  %v2307_v33 = vld [vmem:[%s2841_s1 + $0x190] sm:$0xff]  }
  0x26   : > { %2073 = vmatprep.subr.bf16.mxu1 %v2229_v57  ;;  %v2610_v36 = vcombine.high %v246_v30, %v250_v31  ;;  %v2614_v43 = vcombine.low %v246_v30, %v250_v31  ;;  %v2267_v57 = vld [vmem:[%s2841_s1 + $0x80] sm:$0xff]   ;;  %v2303_v30 = vld [vmem:[%s2841_s1 + $0x188] sm:$0xff]   ;;  %v2306_v31 = vld [vmem:[%s2841_s1 + $0x110] sm:$0xff]  }
  0x27   : > { %1013 = vmatmul.mubr.bf16.vlgmr.msra.gmra.mrb[0].mxu0 %v566_v56  ;;  %v581_v54 = vsel %vm563_vm0, %v579_v38, %v580_v47  ;;  %v578_v55 = vsel %vm563_vm0, %v576_v41, %v577_v49  ;;  %v583_v56 = vrot.slane %v1864_v50, 2  ;;  %v2311_v37 = vld [vmem:[%s2841_s1 + $0x198] sm:$0xff]   ;;  %v2312_v38 = vld [vmem:[%s2841_s1 + $0x160] sm:$0xff]   ;;  %v2317_v47 = vld [vmem:[%s2841_s1 + $0x1e8] sm:$0xff]  }
  0x28   : > { %1054 = vmatmul.mubr.bf16.vlgmr.msra.gmra.mrb[0].mxu1 %v572_v59  ;;  %2052 = vmatpush3.bf16.msra.mxu0 %v2230_v60  ;;  %v585_v48 = vrot.slane %v2610_v36, 2  ;;  %v582_v53 = vrot.slane %v2614_v43, 2  ;;  %v2268_v59 = vld [vmem:[%s2841_s1 + $0x48] sm:$0xff]   ;;  %v2314_v41 = vld [vmem:[%s2841_s1 + $0x120] sm:$0xff]   ;;  %v2320_v50 = vld [vmem:[%s2841_s1 + $0x170] sm:$0xff]  }
  0x29   : > { %2074 = vmatpush3.bf16.msra.mxu1 %v2231_v61  ;;  %2053 = vmatprep.subr.bf16.mxu0 %v2232_v62  ;;  %v2269_v61 = vld [vmem:[%s2841_s1 + $0xc8] sm:$0xff]  }
  0x2a   : > { %2075 = vmatprep.subr.bf16.mxu1 %v2233_v63  ;;  %1094 = vmatprep.mubr.bf16.mxu0 %v581_v54  ;;  %v587_v58 = vsel %vm563_vm0, %v585_v48, %v586_v52  ;;  %v584_v60 = vsel %vm563_vm0, %v582_v53, %v583_v56  ;;  %v2270_v62 = vld [vmem:[%s2841_s1 + $0x8] sm:$0xff]   ;;  %v2322_v52 = vld [vmem:[%s2841_s1 + $0x130] sm:$0xff]   ;;  %v2324_v54 = vld [vmem:[%s2841_s1 + $0x178] sm:$0xff]  }
  0x2b   : > { %1135 = vmatprep.mubr.bf16.mxu1 %v587_v58  ;;  %v2271_v63 = vld [vmem:[%s2841_s1 + $0x88] sm:$0xff]   ;;  %v2323_v53 = vld [vmem:[%s2841_s1 + $0x1b0] sm:$0xff]   ;;  %v2326_v56 = vld [vmem:[%s2841_s1 + $0x138] sm:$0xff]  }
  0x2c   : > { %2054 = vmatpush3.bf16.msra.mxu0 %v2234_v0  ;;  %v2272_v0 = vld [vmem:[%s2841_s1 + $0x50] sm:$0xff]   ;;  %v2318_v48 = vld [vmem:[%s2841_s1 + $0x128] sm:$0xff]  }
  0x2d   : > { %2076 = vmatpush3.bf16.msra.mxu1 %v2235_v1  ;;  %2055 = vmatprep.subr.bf16.mxu0 %v2236_v2  ;;  %v2273_v1 = vld [vmem:[%s2841_s1 + $0xd0] sm:$0xff]   ;;  %v2319_v49 = vld [vmem:[%s2841_s1 + $0x1a8] sm:$0xff]  }
  0x2e   : > { %2077 = vmatprep.subr.bf16.mxu1 %v2237_v3  ;;  %v2274_v2 = vld [vmem:[%s2841_s1 + $0x10] sm:$0xff]  }
  0x2f   : > { %v2275_v3 = vld [vmem:[%s2841_s1 + $0x90] sm:$0xff]  }
  0x30   : > { %2056 = vmatpush3.bf16.msra.mxu0 %v2238_v4  ;;  %v2278_v4 = vld [vmem:[%s2841_s1 + $0x18] sm:$0xff]  }
  0x31   : > { %2078 = vmatpush3.bf16.msra.mxu1 %v2239_v5  ;;  %2057 = vmatprep.subr.bf16.mxu0 %v2240_v6  ;;  %v2279_v5 = vld [vmem:[%s2841_s1 + $0x98] sm:$0xff]   ;;  %v2280_v6 = vld [vmem:[%s2841_s1 + $0x60] sm:$0xff]  }
  0x32   : > { %2079 = vmatprep.subr.bf16.mxu1 %v2241_v7  ;;  %v2281_v7 = vld [vmem:[%s2841_s1 + $0xe0] sm:$0xff]  }
  0x34   : > { %2058 = vmatpush3.bf16.msra.mxu0 %v2242_v8  ;;  %v2282_v8 = vld [vmem:[%s2841_s1 + $0x20] sm:$0xff]  }
  0x35   : > { %2080 = vmatpush3.bf16.msra.mxu1 %v2243_v9  ;;  %2059 = vmatprep.subr.bf16.mxu0 %v2244_v10  ;;  %v2283_v9 = vld [vmem:[%s2841_s1 + $0xa0] sm:$0xff]   ;;  %v2284_v10 = vld [vmem:[%s2841_s1 + $0x68] sm:$0xff]  }
  0x36   : > { %2081 = vmatprep.subr.bf16.mxu1 %v2245_v11  ;;  %v2285_v11 = vld [vmem:[%s2841_s1 + $0xe8] sm:$0xff]  }
  0x38   : > { %2060 = vmatpush3.bf16.msra.mxu0 %v2246_v12  ;;  %v2286_v12 = vld [vmem:[%s2841_s1 + $0x28] sm:$0xff]  }
  0x39   : > { %2082 = vmatpush3.bf16.msra.mxu1 %v2247_v13  ;;  %2061 = vmatprep.subr.bf16.mxu0 %v2248_v14  ;;  %v2287_v13 = vld [vmem:[%s2841_s1 + $0xa8] sm:$0xff]   ;;  %v2288_v14 = vld [vmem:[%s2841_s1 + $0x70] sm:$0xff]  }
  0x3a   : > { %2083 = vmatprep.subr.bf16.mxu1 %v2249_v15  ;;  %v2289_v15 = vld [vmem:[%s2841_s1 + $0xf0] sm:$0xff]  }
  0x3c   : > { %2062 = vmatpush3.bf16.msra.mxu0 %v2250_v16  ;;  %v2290_v16 = vld [vmem:[%s2841_s1 + $0x30] sm:$0xff]  }
  0x3d   : > { %2084 = vmatpush3.bf16.msra.mxu1 %v2251_v17  ;;  %2063 = vmatprep.subr.bf16.mxu0 %v2252_v18  ;;  %v2291_v17 = vld [vmem:[%s2841_s1 + $0xb0] sm:$0xff]   ;;  %v2292_v18 = vld [vmem:[%s2841_s1 + $0x78] sm:$0xff]  }
  0x3e   : > { %2085 = vmatprep.subr.bf16.mxu1 %v2253_v19  ;;  %v2293_v19 = vld [vmem:[%s2841_s1 + $0xf8] sm:$0xff]  }
  0x40   : > { %2064 = vmatpush3.bf16.msra.mxu0 %v2254_v20  ;;  %v2294_v20 = vld [vmem:[%s2841_s1 + $0x38] sm:$0xff]  }
  0x41   : > { %2086 = vmatpush3.bf16.msra.mxu1 %v2255_v21  ;;  %2065 = vmatprep.subr.bf16.mxu0 %v2256_v22  ;;  %v2295_v21 = vld [vmem:[%s2841_s1 + $0xb8] sm:$0xff]   ;;  %v2296_v22 = vld [vmem:[%s2841_s1 + $0x140] sm:$0xff]  }
  0x42   : > { %2087 = vmatprep.subr.bf16.mxu1 %v2257_v23  ;;  %v2297_v23 = vld [vmem:[%s2841_s1 + $0x1c0] sm:$0xff]  }
  0x44   : > { %2066 = vmatpush3.bf16.msra.mxu0 %v2258_v24  ;;  %v2298_v24 = vld [vmem:[%s2841_s1 + $0x100] sm:$0xff]  }
  0x45   : > { %2088 = vmatpush3.bf16.msra.mxu1 %v2259_v25  ;;  %2095 = vmatprep.subr.bf16.mxu0 %v2264_v45  ;;  %v2299_v25 = vld [vmem:[%s2841_s1 + $0x180] sm:$0xff]  }
  0x46   : > { %2117 = vmatprep.subr.bf16.mxu1 %v2265_v46  ;;  %v2315_v45 = vld [vmem:[%s2841_s1 + $0x1a0] sm:$0xff]   ;;  %v2316_v46 = vld [vmem:[%s2841_s1 + $0x168] sm:$0xff]  }
  0x47   : > { %1095 = vmatmul.mubr.bf16.vlgmr.msra.gmra.mrb[4].mxu0 %v578_v55  ;;  %v2325_v55 = vld [vmem:[%s2841_s1 + $0x1f8] sm:$0xff]  }
  0x48   : > { %1136 = vmatmul.mubr.bf16.vlgmr.msra.gmra.mrb[4].mxu1 %v584_v60  ;;  %2096 = vmatpush3.bf16.msra.mxu0 %v2266_v51  ;;  %v2321_v51 = vld [vmem:[%s2841_s1 + $0x1f0] sm:$0xff]  }
  0x49   : > { %2118 = vmatpush3.bf16.msra.mxu1 %v2267_v57  ;;  %2097 = vmatprep.subr.bf16.mxu0 %v2268_v59  ;;  %v2327_v57 = vld [vmem:[%s2841_s1 + $0x1b8] sm:$0xff]  }
  0x4a   : > { %2119 = vmatprep.subr.bf16.mxu1 %v2269_v61  ;;  %1568 = vmatprep.mubr.bf16.mxu0 %v2485_v35  ;;  %v2276_v35 = vld [vmem:[%s2841_s1 + $0x58] sm:$0xff]  }
  0x4b   : > { %1609 = vmatprep.mubr.bf16.mxu1 %v2492_v42  ;;  %v2277_v42 = vld [vmem:[%s2841_s1 + $0xd8] sm:$0xff]  }
  0x4c   : > { %2098 = vmatpush3.bf16.msra.mxu0 %v2270_v62 }
  0x4d   : > { %2120 = vmatpush3.bf16.msra.mxu1 %v2271_v63  ;;  %2099 = vmatprep.subr.bf16.mxu0 %v2272_v0 }
  0x4e   : > { %2121 = vmatprep.subr.bf16.mxu1 %v2273_v1 }
  0x50   : > { %2100 = vmatpush3.bf16.msra.mxu0 %v2274_v2 }
  0x51   : > { %2122 = vmatpush3.bf16.msra.mxu1 %v2275_v3  ;;  %2101 = vmatprep.subr.bf16.mxu0 %v2276_v35 }
  0x52   : > { %2123 = vmatprep.subr.bf16.mxu1 %v2277_v42 }
  0x54   : > { %2102 = vmatpush3.bf16.msra.mxu0 %v2278_v4 }
  0x55   : > { %2124 = vmatpush3.bf16.msra.mxu1 %v2279_v5  ;;  %2103 = vmatprep.subr.bf16.mxu0 %v2280_v6 }
  0x56   : > { %2125 = vmatprep.subr.bf16.mxu1 %v2281_v7 }
  0x58   : > { %2104 = vmatpush3.bf16.msra.mxu0 %v2282_v8 }
  0x59   : > { %2126 = vmatpush3.bf16.msra.mxu1 %v2283_v9  ;;  %2105 = vmatprep.subr.bf16.mxu0 %v2284_v10 }
  0x5a   : > { %2127 = vmatprep.subr.bf16.mxu1 %v2285_v11 }
  0x5c   : > { %2106 = vmatpush3.bf16.msra.mxu0 %v2286_v12 }
  0x5d   : > { %2128 = vmatpush3.bf16.msra.mxu1 %v2287_v13  ;;  %2107 = vmatprep.subr.bf16.mxu0 %v2288_v14 }
  0x5e   : > { %2129 = vmatprep.subr.bf16.mxu1 %v2289_v15 }
  0x60   : > { %2108 = vmatpush3.bf16.msra.mxu0 %v2290_v16 }
  0x61   : > { %2130 = vmatpush3.bf16.msra.mxu1 %v2291_v17  ;;  %2109 = vmatprep.subr.bf16.mxu0 %v2292_v18 }
  0x62   : > { %2131 = vmatprep.subr.bf16.mxu1 %v2293_v19 }
  0x64   : > { %2110 = vmatpush3.bf16.msra.mxu0 %v2294_v20 }
  0x65   : > { %2132 = vmatpush3.bf16.msra.mxu1 %v2295_v21  ;;  %2139 = vmatprep.subr.bf16.mxu0 %v2296_v22 }
  0x66   : > { %2161 = vmatprep.subr.bf16.mxu1 %v2297_v23 }
  0x67   : > { %1569 = vmatmul.mubr.bf16.vlgmr.msra.gmra.mrb[8].mxu0 %v2490_v40  ;;  %v2304_v40 = vld [vmem:[%s2841_s1 + $0x150] sm:$0xff]  }
  0x68   : > { %1610 = vmatmul.mubr.bf16.vlgmr.msra.gmra.mrb[8].mxu1 %v2494_v44  ;;  %2140 = vmatpush3.bf16.msra.mxu0 %v2298_v24  ;;  %v2305_v44 = vld [vmem:[%s2841_s1 + $0x1d0] sm:$0xff]  }
  0x69   : > { %2162 = vmatpush3.bf16.msra.mxu1 %v2299_v25  ;;  %2141 = vmatprep.subr.bf16.mxu0 %v2300_v26 }
  0x6a   : > { %2163 = vmatprep.subr.bf16.mxu1 %v2301_v27  ;;  %1650 = vmatprep.mubr.bf16.mxu0 %v2603_v29  ;;  %v2308_v29 = vld [vmem:[%s2841_s1 + $0x158] sm:$0xff]  }
  0x6b   : > { %1691 = vmatprep.mubr.bf16.mxu1 %v2610_v36  ;;  %v2310_v36 = vld [vmem:[%s2841_s1 + $0x118] sm:$0xff]  }
  0x6c   : > { %2142 = vmatpush3.bf16.msra.mxu0 %v2302_v28 }
  0x6d   : > { %2164 = vmatpush3.bf16.msra.mxu1 %v2303_v30  ;;  %2143 = vmatprep.subr.bf16.mxu0 %v2304_v40 }
  0x6e   : > { %2165 = vmatprep.subr.bf16.mxu1 %v2305_v44 }
  0x70   : > { %2144 = vmatpush3.bf16.msra.mxu0 %v2306_v31 }
  0x71   : > { %2166 = vmatpush3.bf16.msra.mxu1 %v2307_v33  ;;  %2145 = vmatprep.subr.bf16.mxu0 %v2308_v29 }
  0x72   : > { %2167 = vmatprep.subr.bf16.mxu1 %v2309_v34 }
  0x74   : > { %2146 = vmatpush3.bf16.msra.mxu0 %v2310_v36 }
  0x75   : > { %2168 = vmatpush3.bf16.msra.mxu1 %v2311_v37  ;;  %2147 = vmatprep.subr.bf16.mxu0 %v2312_v38 }
  0x76   : > { %2169 = vmatprep.subr.bf16.mxu1 %v2313_v39 }
  0x78   : > { %2148 = vmatpush3.bf16.msra.mxu0 %v2314_v41 }
  0x79   : > { %2170 = vmatpush3.bf16.msra.mxu1 %v2315_v45  ;;  %2149 = vmatprep.subr.bf16.mxu0 %v2316_v46 }
  0x7a   : > { %2171 = vmatprep.subr.bf16.mxu1 %v2317_v47 }
  0x7c   : > { %2150 = vmatpush3.bf16.msra.mxu0 %v2318_v48 }
  0x7d   : > { %2172 = vmatpush3.bf16.msra.mxu1 %v2319_v49  ;;  %2151 = vmatprep.subr.bf16.mxu0 %v2320_v50 }
  0x7e   : > { %2173 = vmatprep.subr.bf16.mxu1 %v2321_v51 }
  0x80   : > { %2152 = vmatpush3.bf16.msra.mxu0 %v2322_v52  ;;  %v1994_v52 = vld [vmem:[%s2842_s2] ss:$0 sm:$0xff] }
  0x81   : > { %2174 = vmatpush3.bf16.msra.mxu1 %v2323_v53  ;;  %2153 = vmatprep.subr.bf16.mxu0 %v2324_v54 }
  0x82   : > { %2175 = vmatprep.subr.bf16.mxu1 %v2325_v55 }
  0x84   : > { %2154 = vmatpush3.bf16.msra.mxu0 %v2326_v56 }
  0x85   : > { %2176 = vmatpush3.bf16.msra.mxu1 %v2327_v57 }
  0x87   : > { %1651 = vmatmul.mubr.bf16.vlgmr.msra.gmra.mrb[12].mxu0 %v2607_v32 }
  0x88   : > { %1692 = vmatmul.mubr.bf16.vlgmr.msra.gmra.mrb[12].mxu1 %v2614_v43 }
  0xfa   : > { %v2023_v58 = vpop.f32.mrb[0].mxu0 }
  0xfb   : > { %v2045_v59 = vpop.f32.mrb[0].mxu1  ;;  %v2024_v60 = vpop.f32.mrb[1].mxu0 }
  0xfc   : > { %v2025_v61 = vadd.f32 %v2024_v60, %v2023_v58  ;;  %v2046_v62 = vpop.f32.mrb[1].mxu1  ;;  %v2026_v63 = vpop.f32.mrb[2].mxu0 }
  0xfd   : > { %v2047_v0 = vadd.f32 %v2046_v62, %v2045_v59  ;;  %v2048_v1 = vpop.f32.mrb[2].mxu1  ;;  %v2027_v2 = vpop.f32.mrb[3].mxu0 }
  0xfe   : > { %v2028_v3 = vadd.f32 %v2027_v2, %v2026_v63  ;;  %v2049_v35 = vpop.f32.mrb[3].mxu1 }
  0xff   : > { %v1056_v42 = vadd.f32 %v2047_v0, %v2025_v61  ;;  %v2050_v4 = vadd.f32 %v2049_v35, %v2048_v1 }
 0x101   : > { %v1059_v5 = vadd.f32 %v2050_v4, %v2028_v3 }
 0x11a   : > { %v2067_v6 = vpop.f32.mrb[4].mxu0 }
 0x11b   : > { %v2089_v7 = vpop.f32.mrb[4].mxu1  ;;  %v2068_v8 = vpop.f32.mrb[5].mxu0 }
 0x11c   : > { %v2069_v32 = vadd.f32 %v2068_v8, %v2067_v6  ;;  %v2090_v9 = vpop.f32.mrb[5].mxu1  ;;  %v2070_v43 = vpop.f32.mrb[6].mxu0 }
 0x11d   : > { %v2091_v10 = vadd.f32 %v2090_v9, %v2089_v7  ;;  %v2092_v11 = vpop.f32.mrb[6].mxu1  ;;  %v2071_v12 = vpop.f32.mrb[7].mxu0 }
 0x11e   : > { %v1097_v13 = vadd.f32 %v2069_v32, %v1056_v42  ;;  %v2072_v14 = vadd.f32 %v2071_v12, %v2070_v43  ;;  %v2093_v15 = vpop.f32.mrb[7].mxu1 }
 0x11f   : > { %v2094_v16 = vadd.f32 %v2093_v15, %v2092_v11 }
 0x120   : > { %v1138_v17 = vadd.f32 %v2091_v10, %v1097_v13  ;;  %v1100_v18 = vadd.f32 %v2072_v14, %v1059_v5 }
 0x122   : > { %v1141_v19 = vadd.f32 %v2094_v16, %v1100_v18 }
 0x13a   : > { %v2111_v20 = vpop.f32.mrb[8].mxu0 }
 0x13b   : > { %v2133_v21 = vpop.f32.mrb[8].mxu1  ;;  %v2112_v22 = vpop.f32.mrb[9].mxu0 }
 0x13c   : > { %v2113_v23 = vadd.f32 %v2112_v22, %v2111_v20  ;;  %v2134_v24 = vpop.f32.mrb[9].mxu1  ;;  %v2114_v25 = vpop.f32.mrb[10].mxu0 }
 0x13d   : > { %v2135_v26 = vadd.f32 %v2134_v24, %v2133_v21  ;;  %v2136_v27 = vpop.f32.mrb[10].mxu1  ;;  %v2115_v28 = vpop.f32.mrb[11].mxu0 }
 0x13e   : > { %v1571_v30 = vadd.f32 %v2113_v23, %v1138_v17  ;;  %v2116_v40 = vadd.f32 %v2115_v28, %v2114_v25  ;;  %v2137_v44 = vpop.f32.mrb[11].mxu1 }
 0x13f   : > { %v2138_v31 = vadd.f32 %v2137_v44, %v2136_v27 }
 0x140   : > { %v1612_v33 = vadd.f32 %v2135_v26, %v1571_v30  ;;  %v1574_v29 = vadd.f32 %v2116_v40, %v1141_v19 }
 0x142   : > { %v1615_v34 = vadd.f32 %v2138_v31, %v1574_v29 }
 0x15a   : > { %v2155_v36 = vpop.f32.mrb[12].mxu0 }
 0x15b   : > { %v2177_v37 = vpop.f32.mrb[12].mxu1  ;;  %v2156_v38 = vpop.f32.mrb[13].mxu0 }
 0x15c   : > { %v2157_v39 = vadd.f32 %v2156_v38, %v2155_v36  ;;  %v2178_v41 = vpop.f32.mrb[13].mxu1  ;;  %v2158_v45 = vpop.f32.mrb[14].mxu0 }
 0x15d   : > { %v2179_v46 = vadd.f32 %v2178_v41, %v2177_v37  ;;  %v2180_v47 = vpop.f32.mrb[14].mxu1  ;;  %v2159_v48 = vpop.f32.mrb[15].mxu0 }
 0x15e   : > { %v1653_v49 = vadd.f32 %v2157_v39, %v1612_v33  ;;  %v2160_v50 = vadd.f32 %v2159_v48, %v2158_v45  ;;  %v2181_v51 = vpop.f32.mrb[15].mxu1 }
 0x15f   : > { %v2182_v53 = vadd.f32 %v2181_v51, %v2180_v47 }
 0x160   : > { %v1694_v54 = vadd.f32 %v2179_v46, %v1653_v49  ;;  %v1656_v55 = vadd.f32 %v2160_v50, %v1615_v34 }
 0x162   : > { %v1707_v56 = vadd.f32 %v1994_v52, %v1694_v54  ;;  %v1697_v57 = vadd.f32 %v2182_v53, %v1656_v55 }
 0x164   : > { %v1708_v58 = vadd.f32 %v1994_v52, %v1697_v57  ;;  %v1727_v59 = vmul.f32 %v1707_v56, %v1707_v56 }
 0x166   : > { %v2005_v60 = vpack.c.bf16 %v1708_v58, %v1707_v56  ;;  %v1719_v61 = vadd.f32 %v1708_v58, %v1707_v56  ;;  %v1728_v62 = vmul.f32 %v1708_v58, %v1708_v58 }
 0x168   : > { %2006 = vst [vmem:[%s235_s9] sm:$0xff] %v2005_v60   ;;  %v1720_v63 = vrot.slane %v1719_v61, 4  ;;  %v1729_v0 = vadd.f32 %v1728_v62, %v1727_v59 }
 0x16a   : > { %v1721_v1 = vadd.f32 %v1720_v63, %v1719_v61  ;;  %v1730_v2 = vrot.slane %v1729_v0, 4 }
 0x16c   : > { %v1722_v3 = vrot.slane %v1721_v1, 2  ;;  %v1731_v35 = vadd.f32 %v1730_v2, %v1729_v0 }
 0x16e   : > { %v1723_v42 = vadd.f32 %v1722_v3, %v1721_v1  ;;  %v1732_v4 = vrot.slane %v1731_v35, 2 }
 0x170   : > { %v1724_v5 = vrot.slane %v1723_v42, 1  ;;  %v1733_v6 = vadd.f32 %v1732_v4, %v1731_v35 }
 0x172   : > { %v1725_v7 = vadd.f32 %v1724_v5, %v1723_v42  ;;  %v1734_v8 = vrot.slane %v1733_v6, 1 }
 0x174   : > { %1726 = vst [vmem:[%s238_s13] sm:$0x1] %v1725_v7  ;;  %v1735_v32 = vadd.f32 %v1734_v8, %v1733_v6 }
 0x176   : > { %1736 = vst [vmem:[%s241_s16] sm:$0x1] %v1735_v32 }
 0x177 PF: > { %s16_s18 = sadd.s32 1, %s2334_s18  }
 0x178   : > { %p13_p4 = scmp.ge.s32.totalorder %s16_s18, 4  }
 0x17a   :  { %15 = sbr.rel (!%p13_p4) target bundleno = 1 (0x1), region = 86 }

// kernel: oord_encoder_forward.15
= control target key start
LH: loop header
LB: loop body
LE: loop exit
PB: predicated region body
PF: predicated region fallthrough
CT: control target
= control target key end

     0   :  { %s701_s24 = smov 0   ;;  %s766_s0 = inlined_call_operand.vmem [shape: bf16[2,16,128], index: 0, kind: input, shape index: {}]   ;;  %s767_s1 = inlined_call_operand.vmem [shape: f32[1,128], index: 1, kind: input, shape index: {}]   ;;  %s768_s2 = inlined_call_operand.vmem [shape: f32[1,128], index: 2, kind: input, shape index: {}]   ;;  %s769_s3 = inlined_call_operand.vmem [shape: bf16[128,128], index: 3, kind: input, shape index: {}]   ;;  %s770_s4 = inlined_call_operand.vmem [shape: f32[1,128], index: 4, kind: input, shape index: {}]   ;;  %s771_s5 = inlined_call_operand.vmem [shape: bf16[2,16,128], index: 5, kind: output, shape index: {0}]   ;;  %s772_s6 = inlined_call_operand.vmem [shape: f32[2,1,128], index: 6, kind: output, shape index: {1}]   ;;  %s773_s7 = inlined_call_operand.vmem [shape: f32[2,1,128], index: 7, kind: output, shape index: {2}]  }
   0x1 LB: > { %s567_s25 = sadd.s32 4294967295, %s657_s24   ;;  %p571_p0 = scmp.ge.s32.totalorder %s657_s24, 1  ;;  %s657_s24 = sphi %s701_s24, %s18_s24  }
   0x2   : > { %p242_p1 = scmp.lt.s32.totalorder %s657_s24, 3 }
   0x4   : > { %p243_p2 = pnand %p571_p0, %p242_p1 }
   0x5   : > { %v643_v0 = vld [vmem:[%s769_s3] sm:$0xff] (!%p243_p2)   ;;  %v659_v1 = vmov (!%p243_p2), 0.0   ;;  %v644_v2 = vld [vmem:[%s769_s3 + $0x8] sm:$0xff] (!%p243_p2)   ;;  %vm660_vm0 = vmmov (!%p243_p2), 0   ;;  %p280_p3 = scmp.lt.s32.totalorder (!%p243_p2), %s567_s25, 1  ;;  %v645_v3 = vld [vmem:[%s769_s3 + $0x10] sm:$0xff] (!%p243_p2)  }
   0x6   : > { %246 = sbr.rel (%p243_p2) target bundleno = 271 (0x10f), region = 40  ;;  %613 = vmatprep.subr.bf16.mxu0 (!%p243_p2), %v659_v1  ;;  %629 = vmatprep.mubr.msk.bf16.mxu0 (!%p243_p2), %vm660_vm0, %v659_v1  ;;  %v646_v4 = vld [vmem:[%s769_s3 + $0x18] sm:$0xff] (!%p243_p2)   ;;  %v647_v8 = vld [vmem:[%s769_s3 + $0x20] sm:$0xff] (!%p243_p2)   ;;  %v648_v12 = vld [vmem:[%s769_s3 + $0x28] sm:$0xff] (!%p243_p2)  }
   0x7   : > { %614 = vmatpush3.bf16.msra.mxu0 (!%p243_p2), %v643_v0  ;;  %v576_v9 = vld [vmem:[%s767_s1] ss:$0 sm:$0xff] (!%p243_p2)  ;;  %v649_v16 = vld [vmem:[%s769_s3 + $0x30] sm:$0xff] (!%p243_p2)   ;;  %v650_v19 = vld [vmem:[%s769_s3 + $0x38] sm:$0xff] (!%p243_p2)  }
   0x8   : > { %615 = vmatprep.subr.bf16.mxu0 (!%p243_p2), %v659_v1  ;;  %v577_v13 = vld [vmem:[%s768_s2] ss:$0 sm:$0xff] (!%p243_p2) }
   0x9   : > { %v578_v21 = vld [vmem:[%s770_s4] ss:$0 sm:$0xff] (!%p243_p2) }
   0xb   : > { %616 = vmatpush3.bf16.msra.mxu0 (!%p243_p2), %v644_v2 }
   0xc   : > { %617 = vmatprep.subr.bf16.mxu0 (!%p243_p2), %v659_v1 }
   0xd   : > { %s775_s25 = smov (!%p280_p3, %s567_s25), 1 }
   0xe   : > { %s591_s9 = sshll.u32 %s775_s25, 3  ;;  %s295_s16 = scalar_lea.vmem %s773_s7, %s775_s25 }
   0xf   : > { %s284_s12 = scalar_lea.vmem %s766_s0, %s591_s9  ;;  %618 = vmatpush3.bf16.msra.mxu0 %v645_v3  ;;  %s289_s11 = scalar_lea.vmem %s771_s5, %s591_s9 }
  0x10   : > { %v596_v5 = vld [vmem:[%s284_s12] sm:$0xff]   ;;  %619 = vmatprep.subr.bf16.mxu0 %v659_v1  ;;  %s292_s9 = scalar_lea.vmem %s772_s6, %s775_s25 }
  0x11   : > { %v597_v6 = vunpack.c.l.bf16 %v596_v5  ;;  %v598_v7 = vunpack.c.h.bf16 %v596_v5 }
  0x13   : > { %620 = vmatpush3.bf16.msra.mxu0 %v646_v4  ;;  %v308_v10 = vmul.f32 %v597_v6, %v576_v9  ;;  %v309_v11 = vmul.f32 %v598_v7, %v576_v9 }
  0x14   : > { %621 = vmatprep.subr.bf16.mxu0 %v659_v1 }
  0x15   : > { %v317_v14 = vadd.f32 %v577_v13, %v308_v10  ;;  %v318_v15 = vadd.f32 %v577_v13, %v309_v11 }
  0x17   : > { %622 = vmatpush3.bf16.msra.mxu0 %v647_v8  ;;  %v319_v17 = vmax.f32 %v317_v14, 0.0  ;;  %v320_v18 = vmax.f32 %v318_v15, 0.0 }
  0x18   : > { %623 = vmatprep.subr.bf16.mxu0 %v659_v1 }
  0x19   : > { %v321_v20 = vpack.c.bf16 %v320_v18, %v319_v17 }
  0x1b   : > { %624 = vmatpush3.bf16.msra.mxu0 %v648_v12 }
  0x1c   : > { %625 = vmatprep.subr.bf16.mxu0 %v659_v1 }
  0x1f   : > { %626 = vmatpush3.bf16.msra.mxu0 %v649_v16 }
  0x20   : > { %627 = vmatprep.subr.bf16.mxu0 %v659_v1 }
  0x23   : > { %628 = vmatpush3.bf16.msra.mxu0 %v650_v19 }
  0x26   : > { %630 = vmatmul.mubr.bf16.vlgmr.msra.gmra.mrb[0].mxu0 %v321_v20 }
  0xf9   : > { %v427_v22 = vpop.f32.mrb[0].mxu0 }
  0xfa   : > { %v428_v23 = vadd.f32 %v578_v21, %v427_v22  ;;  %v631_v24 = vpop.f32.mrb[1].mxu0 }
  0xfb   : > { %v430_v25 = vpop.f32.mrb[2].mxu0 }
  0xfc   : > { %v431_v26 = vadd.f32 %v578_v21, %v430_v25  ;;  %v632_v27 = vpop.f32.mrb[3].mxu0  ;;  %v452_v28 = vmul.f32 %v428_v23, %v428_v23 }
  0xfe   : > { %v602_v29 = vpack.c.bf16 %v431_v26, %v428_v23  ;;  %v444_v30 = vadd.f32 %v431_v26, %v428_v23  ;;  %v453_v31 = vmul.f32 %v431_v26, %v431_v26 }
 0x100   : > { %603 = vst [vmem:[%s289_s11] sm:$0xff] %v602_v29   ;;  %v445_v32 = vrot.slane %v444_v30, 4  ;;  %v454_v33 = vadd.f32 %v453_v31, %v452_v28 }
 0x102   : > { %v446_v34 = vadd.f32 %v445_v32, %v444_v30  ;;  %v455_v35 = vrot.slane %v454_v33, 4 }
 0x104   : > { %v447_v36 = vrot.slane %v446_v34, 2  ;;  %v456_v37 = vadd.f32 %v455_v35, %v454_v33 }
 0x106   : > { %v448_v38 = vadd.f32 %v447_v36, %v446_v34  ;;  %v457_v39 = vrot.slane %v456_v37, 2 }
 0x108   : > { %v449_v40 = vrot.slane %v448_v38, 1  ;;  %v458_v41 = vadd.f32 %v457_v39, %v456_v37 }
 0x10a   : > { %v450_v42 = vadd.f32 %v449_v40, %v448_v38  ;;  %v459_v43 = vrot.slane %v458_v41, 1 }
 0x10c   : > { %451 = vst [vmem:[%s292_s9] sm:$0x1] %v450_v42  ;;  %v460_v44 = vadd.f32 %v459_v43, %v458_v41 }
 0x10e   : > { %461 = vst [vmem:[%s295_s16] sm:$0x1] %v460_v44 }
 0x10f PF: > { %s18_s24 = sadd.s32 1, %s657_s24  }
 0x110   : > { %p15_p4 = scmp.ge.s32.totalorder %s18_s24, 4  }
 0x112   :  { %17 = sbr.rel (!%p15_p4) target bundleno = 1 (0x1), region = 94 }

// kernel: oord_encoder_forward.19
= control target key start
LH: loop header
LB: loop body
LE: loop exit
PB: predicated region body
PF: predicated region fallthrough
CT: control target
= control target key end

     0   :  { %s610_s21 = smov 0   ;;  %s667_s0 = inlined_call_operand.vmem [shape: bf16[2,16,128], index: 0, kind: input, shape index: {}]   ;;  %s668_s1 = inlined_call_operand.vmem [shape: f32[1,128], index: 1, kind: input, shape index: {}]   ;;  %s669_s2 = inlined_call_operand.vmem [shape: f32[1,128], index: 2, kind: input, shape index: {}]   ;;  %s670_s3 = inlined_call_operand.vmem [shape: bf16[2,16,128], index: 3, kind: input, shape index: {}]   ;;  %s671_s4 = inlined_call_operand.vmem [shape: bf16[128,128], index: 4, kind: input, shape index: {}]   ;;  %s672_s5 = inlined_call_operand.vmem [shape: f32[1,128], index: 5, kind: input, shape index: {}]   ;;  %s673_s6 = inlined_call_operand.vmem [shape: f32[2,16,128], index: 6, kind: output, shape index: {}]  }
   0x1 LB: > { %s483_s22 = sadd.s32 4294967295, %s571_s21   ;;  %p487_p0 = scmp.ge.s32.totalorder %s571_s21, 1  ;;  %s571_s21 = sphi %s610_s21, %s16_s21  }
   0x2   : > { %p222_p1 = scmp.lt.s32.totalorder %s571_s21, 3 }
   0x4   : > { %p223_p2 = pnand %p487_p0, %p222_p1 }
   0x5   : > { %v557_v0 = vld [vmem:[%s671_s4] sm:$0xff] (!%p223_p2)   ;;  %v573_v1 = vmov (!%p223_p2), 0.0   ;;  %v558_v2 = vld [vmem:[%s671_s4 + $0x8] sm:$0xff] (!%p223_p2)   ;;  %vm574_vm0 = vmmov (!%p223_p2), 0   ;;  %p257_p3 = scmp.lt.s32.totalorder (!%p223_p2), %s483_s22, 1  ;;  %v559_v3 = vld [vmem:[%s671_s4 + $0x10] sm:$0xff] (!%p223_p2)  }
   0x6   : > { %226 = sbr.rel (%p223_p2) target bundleno = 255 (0xff), region = 44  ;;  %527 = vmatprep.subr.bf16.mxu0 (!%p223_p2), %v573_v1  ;;  %543 = vmatprep.mubr.msk.bf16.mxu0 (!%p223_p2), %vm574_vm0, %v573_v1  ;;  %v560_v4 = vld [vmem:[%s671_s4 + $0x18] sm:$0xff] (!%p223_p2)   ;;  %v561_v8 = vld [vmem:[%s671_s4 + $0x20] sm:$0xff] (!%p223_p2)   ;;  %v562_v12 = vld [vmem:[%s671_s4 + $0x28] sm:$0xff] (!%p223_p2)  }
   0x7   : > { %528 = vmatpush3.bf16.msra.mxu0 (!%p223_p2), %v557_v0  ;;  %v494_v9 = vld [vmem:[%s668_s1] ss:$0 sm:$0xff] (!%p223_p2)  ;;  %v563_v19 = vld [vmem:[%s671_s4 + $0x30] sm:$0xff] (!%p223_p2)   ;;  %v564_v22 = vld [vmem:[%s671_s4 + $0x38] sm:$0xff] (!%p223_p2)  }
   0x8   : > { %529 = vmatprep.subr.bf16.mxu0 (!%p223_p2), %v573_v1  ;;  %v495_v13 = vld [vmem:[%s669_s2] ss:$0 sm:$0xff] (!%p223_p2) }
   0x9   : > { %v496_v24 = vld [vmem:[%s672_s5] ss:$0 sm:$0xff] (!%p223_p2) }
   0xb   : > { %530 = vmatpush3.bf16.msra.mxu0 (!%p223_p2), %v558_v2 }
   0xc   : > { %531 = vmatprep.subr.bf16.mxu0 (!%p223_p2), %v573_v1 }
   0xd   : > { %s675_s22 = smov (!%p257_p3, %s483_s22), 1 }
   0xe   : > { %s507_s29 = sshll.u32 %s675_s22, 3  ;;  %s509_s28 = sshll.u32 %s675_s22, 4 }
   0xf   : > { %s261_s8 = scalar_lea.vmem %s667_s0, %s507_s29  ;;  %532 = vmatpush3.bf16.msra.mxu0 %v559_v3  ;;  %s266_s17 = scalar_lea.vmem %s670_s3, %s507_s29 }
  0x10   : > { %v511_v5 = vld [vmem:[%s261_s8] sm:$0xff]   ;;  %533 = vmatprep.subr.bf16.mxu0 %v573_v1  ;;  %s271_s9 = scalar_lea.vmem %s673_s6, %s509_s28 }
  0x11   : > { %v512_v6 = vunpack.c.l.bf16 %v511_v5  ;;  %v513_v7 = vunpack.c.h.bf16 %v511_v5  ;;  %v515_v14 = vld [vmem:[%s266_s17] sm:$0xff]  }
  0x12   : > { %v516_v17 = vunpack.c.l.bf16 %v515_v14  ;;  %v517_v18 = vunpack.c.h.bf16 %v515_v14 }
  0x13   : > { %534 = vmatpush3.bf16.msra.mxu0 %v560_v4  ;;  %v284_v10 = vmul.f32 %v512_v6, %v494_v9  ;;  %v285_v11 = vmul.f32 %v513_v7, %v494_v9 }
  0x14   : > { %535 = vmatprep.subr.bf16.mxu0 %v573_v1 }
  0x15   : > { %v293_v15 = vadd.f32 %v495_v13, %v284_v10  ;;  %v294_v16 = vadd.f32 %v495_v13, %v285_v11 }
  0x17   : > { %536 = vmatpush3.bf16.msra.mxu0 %v561_v8  ;;  %v299_v20 = vadd.f32 %v516_v17, %v293_v15  ;;  %v300_v21 = vadd.f32 %v517_v18, %v294_v16 }
  0x18   : > { %537 = vmatprep.subr.bf16.mxu0 %v573_v1 }
  0x19   : > { %v301_v23 = vpack.c.bf16 %v300_v21, %v299_v20 }
  0x1b   : > { %538 = vmatpush3.bf16.msra.mxu0 %v562_v12 }
  0x1c   : > { %539 = vmatprep.subr.bf16.mxu0 %v573_v1 }
  0x1f   : > { %540 = vmatpush3.bf16.msra.mxu0 %v563_v19 }
  0x20   : > { %541 = vmatprep.subr.bf16.mxu0 %v573_v1 }
  0x23   : > { %542 = vmatpush3.bf16.msra.mxu0 %v564_v22 }
  0x26   : > { %544 = vmatmul.mubr.bf16.vlgmr.msra.gmra.mrb[0].mxu0 %v301_v23 }
  0xf9   : > { %v407_v25 = vpop.f32.mrb[0].mxu0 }
  0xfa   : > { %v408_v26 = vadd.f32 %v496_v24, %v407_v25  ;;  %v545_v27 = vpop.f32.mrb[1].mxu0 }
  0xfb   : > { %v410_v28 = vpop.f32.mrb[2].mxu0 }
  0xfc   : > { %414 = vst [vmem:[%s271_s9] sm:$0xff] %v408_v26  ;;  %v411_v29 = vadd.f32 %v496_v24, %v410_v28  ;;  %v546_v30 = vpop.f32.mrb[3].mxu0 }
  0xfe   : > { %415 = vst [vmem:[%s271_s9 + $0x8] sm:$0xff] %v411_v29 }
  0xff PF: > { %s16_s21 = sadd.s32 1, %s571_s21  }
 0x100   : > { %p13_p4 = scmp.ge.s32.totalorder %s16_s21, 4  }
 0x102   :  { %15 = sbr.rel (!%p13_p4) target bundleno = 1 (0x1), region = 77 }

// kernel: oord_encoder_forward.14
= control target key start
LH: loop header
LB: loop body
LE: loop exit
PB: predicated region body
PF: predicated region fallthrough
CT: control target
= control target key end

     0   :  { %s1644_s18 = smov 0   ;;  %s1966_s0 = inlined_call_operand.vmem [shape: bf16[2,24,384], index: 0, kind: input, shape index: {}]   ;;  %s1967_s1 = inlined_call_operand.vmem [shape: bf16[1152,128], index: 1, kind: input, shape index: {}]   ;;  %s1968_s2 = inlined_call_operand.vmem [shape: f32[1,128], index: 2, kind: input, shape index: {}]   ;;  %s1969_s3 = inlined_call_operand.vmem [shape: bf16[2,16,128], index: 3, kind: output, shape index: {0}]   ;;  %s1970_s4 = inlined_call_operand.vmem [shape: f32[2,1,128], index: 4, kind: output, shape index: {1}]   ;;  %s1971_s5 = inlined_call_operand.vmem [shape: f32[2,1,128], index: 5, kind: output, shape index: {2}]  }
   0x1 LB: > { %s1264_s19 = sadd.s32 4294967295, %s1609_s18   ;;  %p1268_p0 = scmp.ge.s32.totalorder %s1609_s18, 1  ;;  %s1609_s18 = sphi %s1644_s18, %s16_s18  }
   0x2   : > { %p192_p1 = scmp.lt.s32.totalorder %s1609_s18, 3 }
   0x4   : > { %p193_p2 = pnand %p1268_p0, %p192_p1 }
   0x5   : > { %v1531_v0 = vld [vmem:[%s1967_s1 + $0x100] sm:$0xff] (!%p193_p2)   ;;  %v1611_v1 = vmov (!%p193_p2), 0.0   ;;  %v1534_v4 = vld [vmem:[%s1967_s1 + $0x108] sm:$0xff] (!%p193_p2)   ;;  %v1537_v7 = vld [vmem:[%s1967_s1 + $0x110] sm:$0xff] (!%p193_p2)   ;;  %vm1612_vm0 = vmmov (!%p193_p2), 0   ;;  %p226_p3 = scmp.lt.s32.totalorder (!%p193_p2), %s1264_s19, 1 }
   0x6   : > { %196 = sbr.rel (%p193_p2) target bundleno = 342 (0x156), region = 32  ;;  %1459 = vmatprep.subr.bf16.mxu1 (!%p193_p2), %v1611_v1  ;;  %v1532_v2 = vld [vmem:[%s1967_s1 + $0xc0] sm:$0xff] (!%p193_p2)   ;;  %1366 = vmatprep.subr.bf16.mxu0 (!%p193_p2), %v1531_v0  ;;  %v1535_v5 = vld [vmem:[%s1967_s1 + $0xc8] sm:$0xff] (!%p193_p2)   ;;  %v1538_v8 = vld [vmem:[%s1967_s1 + $0xd0] sm:$0xff] (!%p193_p2)   ;;  %v1613_v27 = vmov (!%p193_p2), 0   ;;  %vm372_vm1 = vcmask (!%p193_p2), 1045504  }
   0x7   : > { %v1533_v3 = vld [vmem:[%s1967_s1 + $0x140] sm:$0xff] (!%p193_p2)   ;;  %1367 = vmatpush3.bf16.msra.mxu0 (!%p193_p2), %v1532_v2  ;;  %v1536_v6 = vld [vmem:[%s1967_s1 + $0x148] sm:$0xff] (!%p193_p2)   ;;  %1475 = vmatprep.mubr.msk.bf16.mxu1 (!%p193_p2), %vm1612_vm0, %v1611_v1  ;;  %v1539_v9 = vld [vmem:[%s1967_s1 + $0x150] sm:$0xff] (!%p193_p2)  }
   0x8   : > { %1460 = vmatpush3.bf16.msra.mxu1 (!%p193_p2), %v1533_v3  ;;  %1368 = vmatprep.subr.bf16.mxu0 (!%p193_p2), %v1534_v4  ;;  %v1540_v10 = vld [vmem:[%s1967_s1 + $0x118] sm:$0xff] (!%p193_p2)   ;;  %v1543_v13 = vld [vmem:[%s1967_s1 + $0x120] sm:$0xff] (!%p193_p2)   ;;  %v1546_v16 = vld [vmem:[%s1967_s1 + $0x128] sm:$0xff] (!%p193_p2)  }
   0x9   : > { %1461 = vmatprep.subr.bf16.mxu1 (!%p193_p2), %v1611_v1  ;;  %v1541_v11 = vld [vmem:[%s1967_s1 + $0xd8] sm:$0xff] (!%p193_p2)   ;;  %v1544_v14 = vld [vmem:[%s1967_s1 + $0xe0] sm:$0xff] (!%p193_p2)   ;;  %v1547_v17 = vld [vmem:[%s1967_s1 + $0xe8] sm:$0xff] (!%p193_p2)  }
   0xa   : > { %v1542_v12 = vld [vmem:[%s1967_s1 + $0x158] sm:$0xff] (!%p193_p2)   ;;  %v1545_v15 = vld [vmem:[%s1967_s1 + $0x160] sm:$0xff] (!%p193_p2)   ;;  %v1548_v18 = vld [vmem:[%s1967_s1 + $0x168] sm:$0xff] (!%p193_p2)  }
   0xb   : > { %1369 = vmatpush3.bf16.msra.mxu0 (!%p193_p2), %v1535_v5  ;;  %v1549_v19 = vld [vmem:[%s1967_s1 + $0x130] sm:$0xff] (!%p193_p2)   ;;  %v1552_v22 = vld [vmem:[%s1967_s1 + $0x138] sm:$0xff] (!%p193_p2)   ;;  %v1555_v39 = vld [vmem:[%s1967_s1 + $0x40] sm:$0xff] (!%p193_p2)  }
   0xc   : > { %1462 = vmatpush3.bf16.msra.mxu1 (!%p193_p2), %v1536_v6  ;;  %1370 = vmatprep.subr.bf16.mxu0 (!%p193_p2), %v1537_v7  ;;  %v1550_v20 = vld [vmem:[%s1967_s1 + $0xf0] sm:$0xff] (!%p193_p2)   ;;  %v1553_v26 = vld [vmem:[%s1967_s1 + $0xf8] sm:$0xff] (!%p193_p2)   ;;  %v1556_v52 = vld [vmem:[%s1967_s1] sm:$0xff] (!%p193_p2)  }
   0xd   : > { %1463 = vmatprep.subr.bf16.mxu1 %v1611_v1  ;;  %s1973_s19 = smov (!%p226_p3, %s1264_s19), 1  ;;  %v1551_v21 = vld [vmem:[%s1967_s1 + $0x170] sm:$0xff]   ;;  %v1554_v34 = vld [vmem:[%s1967_s1 + $0x178] sm:$0xff]   ;;  %v1557_v56 = vld [vmem:[%s1967_s1 + $0x80] sm:$0xff]  }
   0xe   : > { %s1519_s29 = smul.u32 36, %s1973_s19  ;;  %v1558_v57 = vld [vmem:[%s1967_s1 + $0x48] sm:$0xff]   ;;  %v1561_v61 = vld [vmem:[%s1967_s1 + $0x50] sm:$0xff]   ;;  %v1564_v0 = vld [vmem:[%s1967_s1 + $0x58] sm:$0xff]   ;;  %s1358_s7 = sshll.u32 %s1973_s19, 3 }
   0xf   : > { %1371 = vmatpush3.bf16.msra.mxu0 %v1538_v8  ;;  %v1559_v59 = vld [vmem:[%s1967_s1 + $0x8] sm:$0xff]   ;;  %v1562_v62 = vld [vmem:[%s1967_s1 + $0x10] sm:$0xff]   ;;  %v1565_v2 = vld [vmem:[%s1967_s1 + $0x18] sm:$0xff]   ;;  %s235_s10 = scalar_lea.vmem %s1969_s3, %s1358_s7  ;;  %s238_s13 = scalar_lea.vmem %s1970_s4, %s1973_s19 }
  0x10   : > { %1464 = vmatpush3.bf16.msra.mxu1 %v1539_v9  ;;  %1372 = vmatprep.subr.bf16.mxu0 %v1540_v10  ;;  %s230_s15 = scalar_lea.vmem %s1966_s0, %s1519_s29  ;;  %v1560_v60 = vld [vmem:[%s1967_s1 + $0x88] sm:$0xff]   ;;  %v1563_v63 = vld [vmem:[%s1967_s1 + $0x90] sm:$0xff]   ;;  %v1566_v3 = vld [vmem:[%s1967_s1 + $0x98] sm:$0xff]   ;;  %s241_s16 = scalar_lea.vmem %s1971_s5, %s1973_s19 }
  0x11   : > { %1465 = vmatprep.subr.bf16.mxu1 %v1611_v1  ;;  %v243_v23 = vld [vmem:[%s230_s15] sm:$0xff]  ;;  %v245_v24 = vld [vmem:[%s230_s15 + $0xc] sm:$0xff]  ;;  %v247_v25 = vld [vmem:[%s230_s15 + $0x18] sm:$0xff] }
  0x12   : > { %v249_v28 = vmax.bf16 %v1613_v27, %v243_v23  ;;  %v1740_v29 = vmax.bf16 %v1613_v27, %v245_v24  ;;  %v1742_v30 = vmax.bf16 %v1613_v27, %v247_v25  ;;  %v244_v31 = vld [vmem:[%s230_s15 + $0x8] sm:$0xf]  ;;  %v246_v32 = vld [vmem:[%s230_s15 + $0x14] sm:$0xf]  ;;  %v248_v33 = vld [vmem:[%s230_s15 + $0x20] sm:$0xf] }
  0x13   : > { %1373 = vmatpush3.bf16.msra.mxu0 %v1541_v11  ;;  %v250_v40 = vmax.bf16 %v1613_v27, %v244_v31  ;;  %v1758_v41 = vmax.bf16 %v1613_v27, %v246_v32  ;;  %v1760_v42 = vmax.bf16 %v1613_v27, %v248_v33  ;;  %v1567_v4 = vld [vmem:[%s1967_s1 + $0x60] sm:$0xff]   ;;  %v1570_v7 = vld [vmem:[%s1967_s1 + $0x68] sm:$0xff]   ;;  %v1573_v10 = vld [vmem:[%s1967_s1 + $0x70] sm:$0xff]  }
  0x14   : > { %1466 = vmatpush3.bf16.msra.mxu1 %v1542_v12  ;;  %1374 = vmatprep.subr.bf16.mxu0 %v1543_v13  ;;  %v1273_v35 = vcombine.high %v249_v28, %v1740_v29  ;;  %v1276_v36 = vcombine.high %v1742_v30, %v1742_v30  ;;  %v1751_v37 = vcombine.low %v249_v28, %v1740_v29  ;;  %v1568_v5 = vld [vmem:[%s1967_s1 + $0x20] sm:$0xff]   ;;  %v1571_v8 = vld [vmem:[%s1967_s1 + $0x28] sm:$0xff]   ;;  %v1574_v11 = vld [vmem:[%s1967_s1 + $0x30] sm:$0xff]  }
  0x15   : > { %1467 = vmatprep.subr.bf16.mxu1 %v1611_v1  ;;  %v1275_v38 = vcombine.low %v1742_v30, %v1742_v30  ;;  %v1765_v47 = vcombine.low %v250_v40, %v1758_v41  ;;  %v1277_v48 = vcombine.low %v1760_v42, %v1760_v42  ;;  %v1326_v49 = vcombine.low %v1740_v29, %v1742_v30  ;;  %v1569_v6 = vld [vmem:[%s1967_s1 + $0xa0] sm:$0xff]   ;;  %v1572_v9 = vld [vmem:[%s1967_s1 + $0xa8] sm:$0xff]   ;;  %v1575_v12 = vld [vmem:[%s1967_s1 + $0xb0] sm:$0xff]  }
  0x16   : > { %v376_v43 = vrot.slane %v1273_v35, 2  ;;  %v377_v44 = vrot.slane %v1276_v36, 2  ;;  %v373_v45 = vrot.slane %v1751_v37, 2  ;;  %v1328_v53 = vcombine.low %v1758_v41, %v1760_v42  ;;  %v1576_v13 = vld [vmem:[%s1967_s1 + $0x78] sm:$0xff]   ;;  %v1585_v23 = vld [vmem:[%s1967_s1 + $0x1d0] sm:$0xff]   ;;  %v1591_v31 = vld [vmem:[%s1967_s1 + $0x1e0] sm:$0xff]  }
  0x17   : > { %1375 = vmatpush3.bf16.msra.mxu0 %v1544_v14  ;;  %v374_v46 = vrot.slane %v1275_v38, 2  ;;  %v379_v54 = vrot.slane %v1765_v47, 2  ;;  %v380_v55 = vrot.slane %v1277_v48, 2  ;;  %v1577_v14 = vld [vmem:[%s1967_s1 + $0x38] sm:$0xff]   ;;  %v1586_v24 = vld [vmem:[%s1967_s1 + $0x190] sm:$0xff]   ;;  %v1592_v32 = vld [vmem:[%s1967_s1 + $0x1a0] sm:$0xff]  }
  0x18   : > { %1468 = vmatpush3.bf16.msra.mxu1 %v1545_v15  ;;  %1376 = vmatprep.subr.bf16.mxu0 %v1546_v16  ;;  %v378_v50 = vsel %vm372_vm1, %v376_v43, %v377_v44  ;;  %v1578_v15 = vld [vmem:[%s1967_s1 + $0xb8] sm:$0xff]   ;;  %v1579_v16 = vld [vmem:[%s1967_s1 + $0x1c0] sm:$0xff]   ;;  %v1587_v25 = vld [vmem:[%s1967_s1 + $0x210] sm:$0xff]  }
  0x19   : > { %1469 = vmatprep.subr.bf16.mxu1 %v1611_v1  ;;  %v375_v51 = vsel %vm372_vm1, %v373_v45, %v374_v46  ;;  %561 = vmatprep.mubr.bf16.mxu0 %v378_v50  ;;  %v381_v58 = vsel %vm372_vm1, %v379_v54, %v380_v55  ;;  %v1589_v27 = vld [vmem:[%s1967_s1 + $0x198] sm:$0xff]   ;;  %v1593_v33 = vld [vmem:[%s1967_s1 + $0x220] sm:$0xff]   ;;  %v1596_v36 = vld [vmem:[%s1967_s1 + $0x228] sm:$0xff]  }
  0x1a   : > { %v1590_v28 = vld [vmem:[%s1967_s1 + $0x218] sm:$0xff]   ;;  %v1598_v38 = vld [vmem:[%s1967_s1 + $0x1b0] sm:$0xff]  }
  0x1b   : > { %1377 = vmatpush3.bf16.msra.mxu0 %v1547_v17  ;;  %v1580_v17 = vld [vmem:[%s1967_s1 + $0x180] sm:$0xff]   ;;  %v1600_v40 = vld [vmem:[%s1967_s1 + $0x1f8] sm:$0xff]  }
  0x1c   : > { %1470 = vmatpush3.bf16.msra.mxu1 %v1548_v18  ;;  %1378 = vmatprep.subr.bf16.mxu0 %v1549_v19  ;;  %v1581_v18 = vld [vmem:[%s1967_s1 + $0x200] sm:$0xff]   ;;  %v1582_v19 = vld [vmem:[%s1967_s1 + $0x1c8] sm:$0xff]   ;;  %v1601_v43 = vld [vmem:[%s1967_s1 + $0x1b8] sm:$0xff]  }
  0x1d   : > { %1471 = vmatprep.subr.bf16.mxu1 %v1611_v1  ;;  %v1602_v44 = vld [vmem:[%s1967_s1 + $0x238] sm:$0xff]  }
  0x1f   : > { %1379 = vmatpush3.bf16.msra.mxu0 %v1550_v20  ;;  %v1327_v20 = vcombine.high %v1740_v29, %v1742_v30 }
  0x20   : > { %1472 = vmatpush3.bf16.msra.mxu1 %v1551_v21  ;;  %1380 = vmatprep.subr.bf16.mxu0 %v1552_v22  ;;  %v1583_v21 = vld [vmem:[%s1967_s1 + $0x188] sm:$0xff]  }
  0x21   : > { %1473 = vmatprep.subr.bf16.mxu1 %v1611_v1  ;;  %v1584_v22 = vld [vmem:[%s1967_s1 + $0x208] sm:$0xff]  }
  0x23   : > { %1381 = vmatpush3.bf16.msra.mxu0 %v1553_v26  ;;  %v1588_v26 = vld [vmem:[%s1967_s1 + $0x1d8] sm:$0xff]  }
  0x24   : > { %1474 = vmatpush3.bf16.msra.mxu1 %v1554_v34  ;;  %1397 = vmatprep.subr.bf16.mxu0 %v1555_v39  ;;  %v1594_v34 = vld [vmem:[%s1967_s1 + $0x1e8] sm:$0xff]   ;;  %v1599_v39 = vld [vmem:[%s1967_s1 + $0x230] sm:$0xff]  }
  0x25   : > { %1479 = vmatprep.subr.bf16.mxu1 %v1611_v1 }
  0x26   : > { %562 = vmatmul.mubr.bf16.vlgmr.msra.gmra.mrb[0].mxu0 %v375_v51 }
  0x27   : > { %1476 = vmatmul.mubr.bf16.vlgmr.msra.gmra.mrb[0].mxu1 %v381_v58  ;;  %1398 = vmatpush3.bf16.msra.mxu0 %v1556_v52 }
  0x28   : > { %1480 = vmatpush3.bf16.msra.mxu1 %v1557_v56  ;;  %1399 = vmatprep.subr.bf16.mxu0 %v1558_v57 }
  0x29   : > { %1481 = vmatprep.subr.bf16.mxu1 %v1611_v1  ;;  %790 = vmatprep.mubr.bf16.mxu0 %v1273_v35  ;;  %v1595_v35 = vld [vmem:[%s1967_s1 + $0x1a8] sm:$0xff]  }
  0x2a   : > { %1495 = vmatprep.mubr.msk.bf16.mxu1 %vm1612_vm0, %v1611_v1 }
  0x2b   : > { %1400 = vmatpush3.bf16.msra.mxu0 %v1559_v59 }
  0x2c   : > { %1482 = vmatpush3.bf16.msra.mxu1 %v1560_v60  ;;  %1401 = vmatprep.subr.bf16.mxu0 %v1561_v61 }
  0x2d   : > { %1483 = vmatprep.subr.bf16.mxu1 %v1611_v1 }
  0x2f   : > { %1402 = vmatpush3.bf16.msra.mxu0 %v1562_v62 }
  0x30   : > { %1484 = vmatpush3.bf16.msra.mxu1 %v1563_v63  ;;  %1403 = vmatprep.subr.bf16.mxu0 %v1564_v0 }
  0x31   : > { %1485 = vmatprep.subr.bf16.mxu1 %v1611_v1 }
  0x33   : > { %1404 = vmatpush3.bf16.msra.mxu0 %v1565_v2 }
  0x34   : > { %1486 = vmatpush3.bf16.msra.mxu1 %v1566_v3  ;;  %1405 = vmatprep.subr.bf16.mxu0 %v1567_v4 }
  0x35   : > { %1487 = vmatprep.subr.bf16.mxu1 %v1611_v1 }
  0x37   : > { %1406 = vmatpush3.bf16.msra.mxu0 %v1568_v5 }
  0x38   : > { %1488 = vmatpush3.bf16.msra.mxu1 %v1569_v6  ;;  %1407 = vmatprep.subr.bf16.mxu0 %v1570_v7 }
  0x39   : > { %1489 = vmatprep.subr.bf16.mxu1 %v1611_v1 }
  0x3b   : > { %1408 = vmatpush3.bf16.msra.mxu0 %v1571_v8 }
  0x3c   : > { %1490 = vmatpush3.bf16.msra.mxu1 %v1572_v9  ;;  %1409 = vmatprep.subr.bf16.mxu0 %v1573_v10 }
  0x3d   : > { %1491 = vmatprep.subr.bf16.mxu1 %v1611_v1 }
  0x3f   : > { %1410 = vmatpush3.bf16.msra.mxu0 %v1574_v11 }
  0x40   : > { %1492 = vmatpush3.bf16.msra.mxu1 %v1575_v12  ;;  %1411 = vmatprep.subr.bf16.mxu0 %v1576_v13 }
  0x41   : > { %1493 = vmatprep.subr.bf16.mxu1 %v1611_v1 }
  0x43   : > { %1412 = vmatpush3.bf16.msra.mxu0 %v1577_v14  ;;  %v1353_v14 = vld [vmem:[%s1968_s2] ss:$0 sm:$0xff] }
  0x44   : > { %1494 = vmatpush3.bf16.msra.mxu1 %v1578_v15  ;;  %1428 = vmatprep.subr.bf16.mxu0 %v1579_v16 }
  0x45   : > { %1499 = vmatprep.subr.bf16.mxu1 %v1611_v1 }
  0x46   : > { %791 = vmatmul.mubr.bf16.vlgmr.msra.gmra.mrb[4].mxu0 %v1751_v37  ;;  %v1597_v37 = vld [vmem:[%s1967_s1 + $0x1f0] sm:$0xff]  }
  0x47   : > { %1496 = vmatmul.mubr.bf16.vlgmr.msra.gmra.mrb[4].mxu1 %v1765_v47  ;;  %1429 = vmatpush3.bf16.msra.mxu0 %v1580_v17 }
  0x48   : > { %1500 = vmatpush3.bf16.msra.mxu1 %v1581_v18  ;;  %1430 = vmatprep.subr.bf16.mxu0 %v1582_v19 }
  0x49   : > { %1501 = vmatprep.subr.bf16.mxu1 %v1611_v1  ;;  %1070 = vmatprep.mubr.bf16.mxu0 %v1327_v20 }
  0x4a   : > { %1515 = vmatprep.mubr.msk.bf16.mxu1 %vm1612_vm0, %v1611_v1 }
  0x4b   : > { %1431 = vmatpush3.bf16.msra.mxu0 %v1583_v21 }
  0x4c   : > { %1502 = vmatpush3.bf16.msra.mxu1 %v1584_v22  ;;  %1432 = vmatprep.subr.bf16.mxu0 %v1585_v23 }
  0x4d   : > { %1503 = vmatprep.subr.bf16.mxu1 %v1611_v1 }
  0x4f   : > { %1433 = vmatpush3.bf16.msra.mxu0 %v1586_v24 }
  0x50   : > { %1504 = vmatpush3.bf16.msra.mxu1 %v1587_v25  ;;  %1434 = vmatprep.subr.bf16.mxu0 %v1588_v26 }
  0x51   : > { %1505 = vmatprep.subr.bf16.mxu1 %v1611_v1 }
  0x53   : > { %1435 = vmatpush3.bf16.msra.mxu0 %v1589_v27 }
  0x54   : > { %1506 = vmatpush3.bf16.msra.mxu1 %v1590_v28  ;;  %1436 = vmatprep.subr.bf16.mxu0 %v1591_v31 }
  0x55   : > { %1507 = vmatprep.subr.bf16.mxu1 %v1611_v1 }
  0x57   : > { %1437 = vmatpush3.bf16.msra.mxu0 %v1592_v32 }
  0x58   : > { %1508 = vmatpush3.bf16.msra.mxu1 %v1593_v33  ;;  %1438 = vmatprep.subr.bf16.mxu0 %v1594_v34 }
  0x59   : > { %1509 = vmatprep.subr.bf16.mxu1 %v1611_v1 }
  0x5b   : > { %1439 = vmatpush3.bf16.msra.mxu0 %v1595_v35 }
  0x5c   : > { %1510 = vmatpush3.bf16.msra.mxu1 %v1596_v36  ;;  %1440 = vmatprep.subr.bf16.mxu0 %v1597_v37 }
  0x5d   : > { %1511 = vmatprep.subr.bf16.mxu1 %v1611_v1 }
  0x5f   : > { %1441 = vmatpush3.bf16.msra.mxu0 %v1598_v38 }
  0x60   : > { %1512 = vmatpush3.bf16.msra.mxu1 %v1599_v39  ;;  %1442 = vmatprep.subr.bf16.mxu0 %v1600_v40 }
  0x61   : > { %1513 = vmatprep.subr.bf16.mxu1 %v1611_v1 }
  0x63   : > { %1443 = vmatpush3.bf16.msra.mxu0 %v1601_v43 }
  0x64   : > { %1514 = vmatpush3.bf16.msra.mxu1 %v1602_v44 }
  0x66   : > { %1071 = vmatmul.mubr.bf16.vlgmr.msra.gmra.mrb[8].mxu0 %v1326_v49 }
  0x67   : > { %1516 = vmatmul.mubr.bf16.vlgmr.msra.gmra.mrb[8].mxu1 %v1328_v53 }
  0xf9   : > { %v1382_v45 = vpop.f32.mrb[0].mxu0 }
  0xfa   : > { %v1383_v46 = vpop.f32.mrb[1].mxu0  ;;  %v604_v47 = vpop.f32.mrb[0].mxu1 }
  0xfb   : > { %v1384_v48 = vadd.f32 %v1383_v46, %v1382_v45  ;;  %v1385_v50 = vpop.f32.mrb[2].mxu0  ;;  %v1477_v51 = vpop.f32.mrb[1].mxu1 }
  0xfc   : > { %v1386_v52 = vpop.f32.mrb[3].mxu0  ;;  %v607_v54 = vpop.f32.mrb[2].mxu1 }
  0xfd   : > { %v605_v55 = vadd.f32 %v1384_v48, %v604_v47  ;;  %v1387_v1 = vadd.f32 %v1386_v52, %v1385_v50  ;;  %v1478_v56 = vpop.f32.mrb[3].mxu1 }
  0xff   : > { %v608_v57 = vadd.f32 %v1387_v1, %v607_v54 }
 0x119   : > { %v1413_v58 = vpop.f32.mrb[4].mxu0 }
 0x11a   : > { %v1414_v59 = vpop.f32.mrb[5].mxu0  ;;  %v833_v29 = vpop.f32.mrb[4].mxu1 }
 0x11b   : > { %v1415_v30 = vadd.f32 %v1414_v59, %v1413_v58  ;;  %v1416_v49 = vpop.f32.mrb[6].mxu0  ;;  %v1497_v60 = vpop.f32.mrb[5].mxu1 }
 0x11c   : > { %v1417_v41 = vpop.f32.mrb[7].mxu0  ;;  %v836_v42 = vpop.f32.mrb[6].mxu1 }
 0x11d   : > { %v793_v53 = vadd.f32 %v1415_v30, %v605_v55  ;;  %v1418_v61 = vadd.f32 %v1417_v41, %v1416_v49  ;;  %v1498_v62 = vpop.f32.mrb[7].mxu1 }
 0x11f   : > { %v834_v63 = vadd.f32 %v833_v29, %v793_v53  ;;  %v796_v0 = vadd.f32 %v1418_v61, %v608_v57 }
 0x121   : > { %v837_v2 = vadd.f32 %v836_v42, %v796_v0 }
 0x139   : > { %v1444_v3 = vpop.f32.mrb[8].mxu0 }
 0x13a   : > { %v1113_v4 = vpop.f32.mrb[8].mxu1  ;;  %v1445_v5 = vpop.f32.mrb[9].mxu0 }
 0x13b   : > { %v1446_v6 = vadd.f32 %v1445_v5, %v1444_v3  ;;  %v1517_v7 = vpop.f32.mrb[9].mxu1  ;;  %v1447_v8 = vpop.f32.mrb[10].mxu0 }
 0x13c   : > { %v1116_v9 = vpop.f32.mrb[10].mxu1  ;;  %v1448_v10 = vpop.f32.mrb[11].mxu0 }
 0x13d   : > { %v1114_v11 = vadd.f32 %v1446_v6, %v1113_v4  ;;  %v1449_v12 = vadd.f32 %v1448_v10, %v1447_v8  ;;  %v1518_v13 = vpop.f32.mrb[11].mxu1 }
 0x13f   : > { %v1120_v15 = vadd.f32 %v1114_v11, %v834_v63  ;;  %v1117_v16 = vadd.f32 %v1449_v12, %v1116_v9 }
 0x141   : > { %v1129_v17 = vadd.f32 %v1353_v14, %v1120_v15  ;;  %v1121_v18 = vadd.f32 %v1117_v16, %v837_v2 }
 0x143   : > { %v1130_v19 = vadd.f32 %v1353_v14, %v1121_v18  ;;  %v1149_v20 = vmul.f32 %v1129_v17, %v1129_v17 }
 0x145   : > { %v1364_v21 = vpack.c.bf16 %v1130_v19, %v1129_v17  ;;  %v1141_v22 = vadd.f32 %v1130_v19, %v1129_v17  ;;  %v1150_v23 = vmul.f32 %v1130_v19, %v1130_v19 }
 0x147   : > { %1365 = vst [vmem:[%s235_s10] sm:$0xff] %v1364_v21   ;;  %v1142_v24 = vrot.slane %v1141_v22, 4  ;;  %v1151_v25 = vadd.f32 %v1150_v23, %v1149_v20 }
 0x149   : > { %v1143_v26 = vadd.f32 %v1142_v24, %v1141_v22  ;;  %v1152_v27 = vrot.slane %v1151_v25, 4 }
 0x14b   : > { %v1144_v28 = vrot.slane %v1143_v26, 2  ;;  %v1153_v31 = vadd.f32 %v1152_v27, %v1151_v25 }
 0x14d   : > { %v1145_v32 = vadd.f32 %v1144_v28, %v1143_v26  ;;  %v1154_v33 = vrot.slane %v1153_v31, 2 }
 0x14f   : > { %v1146_v34 = vrot.slane %v1145_v32, 1  ;;  %v1155_v35 = vadd.f32 %v1154_v33, %v1153_v31 }
 0x151   : > { %v1147_v36 = vadd.f32 %v1146_v34, %v1145_v32  ;;  %v1156_v37 = vrot.slane %v1155_v35, 1 }
 0x153   : > { %1148 = vst [vmem:[%s238_s13] sm:$0x1] %v1147_v36  ;;  %v1157_v38 = vadd.f32 %v1156_v37, %v1155_v35 }
 0x155   : > { %1158 = vst [vmem:[%s241_s16] sm:$0x1] %v1157_v38 }
 0x156 PF: > { %s16_s18 = sadd.s32 1, %s1609_s18  }
 0x157   : > { %p13_p4 = scmp.ge.s32.totalorder %s16_s18, 4  }
 0x159   :  { %15 = sbr.rel (!%p13_p4) target bundleno = 1 (0x1), region = 86 }

</bundles_post_ra>
